<compile_context>
chip_gen: v5e
topology: v5e:2x2
jax: 0.10.0
libtpu: 0.0.40
codegen_flags: <defaults>
</compile_context>

<pallas_src>
import functools

import jax
import jax.numpy as jnp
import numpy as np
from jax.experimental import pallas as pl
from jax.experimental.pallas import tpu as pltpu


# ----------------------------- Pallas kernel -----------------------------
def _lstm_decoder_kernel(H, T,
                         z_ref, wih_ref, whh_ref, b_ref,
                         wout_ref, bout_ref, wfc1_ref, bfc1_ref,
                         out_ref):
    Bp = z_ref.shape[0]

    # Load everything once (single invocation; all refs live in VMEM).
    x = z_ref[...]                                  # (Bp, L)
    wih = wih_ref[...]                              # (L, 8H)
    whh = whh_ref[...]                              # (2H, 8H)
    b = b_ref[...]                                  # (1, 8H)
    wout = wout_ref[...]                            # (2H, L)  (top H rows zero)
    bout = bout_ref[...]                            # (1, L)
    wfc1 = wfc1_ref[...]                            # (2H, 1)
    bfc1 = bfc1_ref[...]                            # (1, 1)

    h_cat = jnp.zeros((Bp, 2 * H), jnp.float32)     # [h_fwd | h_bwd]
    c_cat = jnp.zeros((Bp, 2 * H), jnp.float32)     # [c_fwd | c_bwd]

    # Lane mask selecting the "g" gate columns (tanh); everything else sigmoid.
    col = jax.lax.broadcasted_iota(jnp.int32, (Bp, 8 * H), 1)
    g_mask = (col >= 4 * H) & (col < 6 * H)

    ys = []
    # T is a small static Python int -> fully unrolled recurrence (equivalent to
    # lax.fori_loop(..., unroll=True)); gives the scheduler full visibility.
    for _ in range(T):
        gates = (jnp.dot(x, wih, preferred_element_type=jnp.float32)
                 + jnp.dot(h_cat, whh, preferred_element_type=jnp.float32)
                 + b)                                # (Bp, 8H)
        act = jnp.where(g_mask, jnp.tanh(gates), jax.nn.sigmoid(gates))

        i_cat = act[:, 0 * H:2 * H]
        f_cat = act[:, 2 * H:4 * H]
        g_cat = act[:, 4 * H:6 * H]
        o_cat = act[:, 6 * H:8 * H]

        c_cat = f_cat * c_cat + i_cat * g_cat
        h_cat = o_cat * jnp.tanh(c_cat)

        # step output: fc1(relu(concat(h_f, h_b))) -- single dot on h_cat
        y = (jnp.dot(jnp.maximum(h_cat, 0.0), wfc1,
                     preferred_element_type=jnp.float32) + bfc1)     # (Bp, 1)
        ys.append(y)

        # next decoder input: self.out(h_bwd); top-H rows of wout are zero so
        # only the backward half of h_cat contributes.
        x = jnp.dot(h_cat, wout, preferred_element_type=jnp.float32) + bout

    # Single lane-dense writeback of the whole (Bp, T) output slab.
    out_ref[...] = jnp.concatenate(ys, axis=1)


# ------------------------------- wrapper ----------------------------------
def lstm_decoder_forward(packed, decoder_input, max_len):
    """decoder_input: (B, L) float32; max_len: static Python int (= max(lengths)).
    Returns (B, max_len, 1), matching the PyTorch module output."""
    B, L = decoder_input.shape
    H = packed["w_hh_cat"].shape[0] // 2
    T = int(max_len)
    Bp = max(8, ((B + 7) // 8) * 8)                 # pad batch to full sublanes

    z = jnp.zeros((Bp, L), jnp.float32).at[:B, :].set(decoder_input)

    in_arrays = [
        z,
        packed["w_ih_cat"], packed["w_hh_cat"], packed["b_cat"],
        packed["w_out_cat"], packed["b_out"],
        packed["w_fc1_T"], packed["b_fc1"],
    ]
    vmem_spec = pl.BlockSpec(memory_space=pltpu.MemorySpace.VMEM)

    out = pl.pallas_call(
        functools.partial(_lstm_decoder_kernel, H, T),
        out_shape=jax.ShapeDtypeStruct((Bp, T), jnp.float32),
        in_specs=[vmem_spec] * len(in_arrays),
        out_specs=vmem_spec,
    )(*in_arrays)

    return out[:B, :, None]                          # (B, T, 1)


# --------------------------- parameter setup -------------------------------
def init_params(key, latent_dims, hidden_dim):
    """Raw PyTorch-style parameters (gate order i, f, g, o)."""
    L, H = latent_dims, hidden_dim
    k = 1.0 / np.sqrt(H)
    keys = jax.random.split(key, 12)
    u = lambda kk, shape: jax.random.uniform(kk, shape, jnp.float32, -k, k)

    w_ih_f = u(keys[0], (4 * H, L)); w_hh_f = u(keys[1], (4 * H, H))
    b_ih_f = u(keys[2], (4 * H,));   b_hh_f = u(keys[3], (4 * H,))
    w_ih_b = u(keys[4], (4 * H, L)); w_hh_b = u(keys[5], (4 * H, H))
    b_ih_b = u(keys[6], (4 * H,));   b_hh_b = u(keys[7], (4 * H,))
    w_out = u(keys[8], (L, H));      b_out = u(keys[9], (L,))
    kf = 1.0 / np.sqrt(2 * H)
    w_fc1 = jax.random.uniform(keys[10], (1, 2 * H), jnp.float32, -kf, kf)
    b_fc1 = jax.random.uniform(keys[11], (1,), jnp.float32, -kf, kf)

    return dict(w_ih_f=w_ih_f, w_hh_f=w_hh_f, b_ih_f=b_ih_f, b_hh_f=b_hh_f,
                w_ih_b=w_ih_b, w_hh_b=w_hh_b, b_ih_b=b_ih_b, b_hh_b=b_hh_b,
                w_out=w_out, b_out=b_out, w_fc1=w_fc1, b_fc1=b_fc1)


def pack_params(p):
    """Fuse fwd/bwd weights for the kernel.
    Column layout of the 8H gate axis: [i_f, i_b, f_f, f_b, g_f, g_b, o_f, o_b],
    row layout of the 2H hidden axis: [fwd | bwd]."""
    H = p["w_hh_f"].shape[1]
    L = p["w_ih_f"].shape[1]
    zHH = jnp.zeros((H, H), jnp.float32)
    bf = p["b_ih_f"] + p["b_hh_f"]
    bb = p["b_ih_b"] + p["b_hh_b"]

    wih_blocks, whh_blocks, b_blocks = [], [], []
    for g in range(4):                               # i, f, g, o
        sl = slice(g * H, (g + 1) * H)
        wih_blocks += [p["w_ih_f"][sl].T, p["w_ih_b"][sl].T]          # (L, H) each
        whh_blocks += [jnp.concatenate([p["w_hh_f"][sl].T, zHH], 0),  # (2H, H)
                       jnp.concatenate([zHH, p["w_hh_b"][sl].T], 0)]  # (2H, H)
        b_blocks += [bf[sl], bb[sl]]

    w_ih_cat = jnp.concatenate(wih_blocks, axis=1)    # (L, 8H)
    w_hh_cat = jnp.concatenate(whh_blocks, axis=1)    # (2H, 8H)
    b_cat = jnp.concatenate(b_blocks)[None, :]        # (1, 8H)

    # next-input projection: only h_bwd contributes -> zero top H rows
    w_out_cat = jnp.concatenate(
        [jnp.zeros((H, L), jnp.float32), p["w_out"].T], axis=0)       # (2H, L)

    return dict(w_ih_cat=w_ih_cat, w_hh_cat=w_hh_cat, b_cat=b_cat,
                w_out_cat=w_out_cat, b_out=p["b_out"][None, :],
                w_fc1_T=p["w_fc1"].T, b_fc1=p["b_fc1"][None, :])


# ------------------------- pure-JAX reference -------------------------------
def reference_forward(p, z, T):
    """Unfused reference on the raw PyTorch-style params (validates packing too)."""
    B, L = z.shape
    H = p["w_hh_f"].shape[1]
    x = z
    hf = cf = hb = cb = jnp.zeros((B, H), jnp.float32)
    bf = (p["b_ih_f"] + p["b_hh_f"])[None, :]
    bb = (p["b_ih_b"] + p["b_hh_b"])[None, :]

    def cell(x, h, c, w_ih, w_hh, b):
        g = x @ w_ih.T + h @ w_hh.T + b
        i = jax.nn.sigmoid(g[:, :H]);       f = jax.nn.sigmoid(g[:, H:2 * H])
        gg = jnp.tanh(g[:, 2 * H:3 * H]);   o = jax.nn.sigmoid(g[:, 3 * H:])
        c = f * c + i * gg
        return o * jnp.tanh(c), c

    outs = []
    for _ in range(T):
        hf, cf = cell(x, hf, cf, p["w_ih_f"], p["w_hh_f"], bf)
        hb, cb = cell(x, hb, cb, p["w_ih_b"], p["w_hh_b"], bb)
        cat = jnp.concatenate([hf, hb], axis=-1)
        outs.append(jnp.maximum(cat, 0.0) @ p["w_fc1"].T + p["b_fc1"][None, :])
        x = hb @ p["w_out"].T + p["b_out"][None, :]
    return jnp.stack(outs, axis=1)                   # (B, T, 1)


if __name__ == "__main__":
    latent_dims, hidden_dim, bs = 8, 32, 2
    key = jax.random.PRNGKey(0)
    kp, kz = jax.random.split(key)

    raw = init_params(kp, latent_dims, hidden_dim)
    packed = pack_params(raw)

    decoder_input = jax.random.normal(kz, (bs, latent_dims), jnp.float32)
    lengths = jnp.array([5, 8], dtype=jnp.int32)
    # torch.max(lengths) drives range(); computed once on the host as a static int.
    T = int(np.max(np.asarray(lengths)))
    # TODO(synk): like the PyTorch module, outputs past each sequence's own length
    # are computed but not masked (only max(lengths) is used).

    out = lstm_decoder_forward(packed, decoder_input, T)
    out = jax.block_until_ready(out)

    ref = reference_forward(raw, decoder_input, T)
    assert out.shape == (bs, T, 1)
    np.testing.assert_allclose(np.asarray(out), np.asarray(ref),
                               rtol=1e-5, atol=1e-5)
    print("KERNEL_OK")
</pallas_src>

<mosaic_0001>
module attributes {stable_mosaic.version = 11 : i64} {
  func.func @_lstm_decoder_kernel(%arg0: memref<8x8xf32, #tpu.memory_space<vmem>>, %arg1: memref<8x256xf32, #tpu.memory_space<vmem>>, %arg2: memref<64x256xf32, #tpu.memory_space<vmem>>, %arg3: memref<1x256xf32, #tpu.memory_space<vmem>>, %arg4: memref<64x8xf32, #tpu.memory_space<vmem>>, %arg5: memref<1x8xf32, #tpu.memory_space<vmem>>, %arg6: memref<64x1xf32, #tpu.memory_space<vmem>>, %arg7: memref<1x1xf32, #tpu.memory_space<vmem>>, %arg8: memref<8x8xf32, #tpu.memory_space<vmem>>) attributes {dimension_semantics = [], scalar_prefetch = 0 : i64, scratch_operands = 0 : i64, tpu.core_type = #tpu.core_type<tc>} {
    %c0 = arith.constant 0 : index
    %c0_0 = arith.constant 0 : index
    %0 = vector.load %arg0[%c0, %c0_0] : memref<8x8xf32, #tpu.memory_space<vmem>>, vector<8x8xf32>
    %c0_1 = arith.constant 0 : index
    %c0_2 = arith.constant 0 : index
    %1 = vector.load %arg1[%c0_1, %c0_2] : memref<8x256xf32, #tpu.memory_space<vmem>>, vector<8x256xf32>
    %c0_3 = arith.constant 0 : index
    %c0_4 = arith.constant 0 : index
    %2 = vector.load %arg2[%c0_3, %c0_4] : memref<64x256xf32, #tpu.memory_space<vmem>>, vector<64x256xf32>
    %c0_5 = arith.constant 0 : index
    %c0_6 = arith.constant 0 : index
    %3 = vector.load %arg3[%c0_5, %c0_6] : memref<1x256xf32, #tpu.memory_space<vmem>>, vector<1x256xf32>
    %c0_7 = arith.constant 0 : index
    %c0_8 = arith.constant 0 : index
    %4 = vector.load %arg4[%c0_7, %c0_8] : memref<64x8xf32, #tpu.memory_space<vmem>>, vector<64x8xf32>
    %c0_9 = arith.constant 0 : index
    %c0_10 = arith.constant 0 : index
    %5 = vector.load %arg5[%c0_9, %c0_10] : memref<1x8xf32, #tpu.memory_space<vmem>>, vector<1x8xf32>
    %c0_11 = arith.constant 0 : index
    %c0_12 = arith.constant 0 : index
    %6 = vector.load %arg6[%c0_11, %c0_12] : memref<64x1xf32, #tpu.memory_space<vmem>>, vector<64x1xf32>
    %c0_13 = arith.constant 0 : index
    %c0_14 = arith.constant 0 : index
    %7 = vector.load %arg7[%c0_13, %c0_14] : memref<1x1xf32, #tpu.memory_space<vmem>>, vector<1x1xf32>
    %cst = arith.constant 0.000000e+00 : f32
    %8 = vector.broadcast %cst : f32 to vector<8x64xf32>
    %cst_15 = arith.constant 0.000000e+00 : f32
    %9 = vector.broadcast %cst_15 : f32 to vector<8x64xf32>
    %10 = tpu.iota {dimensions = array<i32: 1>} : vector<8x256xi32>
    %c128_i32 = arith.constant 128 : i32
    %11 = vector.broadcast %c128_i32 : i32 to vector<8x256xi32>
    %12 = arith.cmpi sge, %10, %11 : vector<8x256xi32>
    %c192_i32 = arith.constant 192 : i32
    %13 = vector.broadcast %c192_i32 : i32 to vector<8x256xi32>
    %14 = arith.cmpi slt, %10, %13 : vector<8x256xi32>
    %15 = arith.andi %12, %14 : vector<8x256xi1>
    %cst_16 = arith.constant dense<0.000000e+00> : vector<8x256xf32>
    %16 = tpu.matmul %0, %1, %cst_16 {dimension_numbers = #tpu.dot_dimension_numbers<[1], [0], [0], [1], [0, 0, 1, 1], [], []>} : vector<8x8xf32>, vector<8x256xf32>, vector<8x256xf32> -> vector<8x256xf32>
    %cst_17 = arith.constant dense<0.000000e+00> : vector<8x256xf32>
    %17 = tpu.matmul %8, %2, %cst_17 {dimension_numbers = #tpu.dot_dimension_numbers<[1], [0], [0], [1], [0, 0, 1, 1], [], []>} : vector<8x64xf32>, vector<64x256xf32>, vector<8x256xf32> -> vector<8x256xf32>
    %18 = arith.addf %16, %17 : vector<8x256xf32>
    %19 = vector.broadcast %3 : vector<1x256xf32> to vector<8x256xf32>
    %20 = arith.addf %18, %19 : vector<8x256xf32>
    %21 = math.tanh %20 : vector<8x256xf32>
    %22 = arith.negf %20 : vector<8x256xf32>
    %23 = math.exp %22 : vector<8x256xf32>
    %cst_18 = arith.constant 1.000000e+00 : f32
    %24 = vector.broadcast %cst_18 : f32 to vector<8x256xf32>
    %25 = arith.addf %24, %23 : vector<8x256xf32>
    %26 = arith.divf %24, %25 : vector<8x256xf32>
    %27 = arith.select %15, %21, %26 : vector<8x256xi1>, vector<8x256xf32>
    %28 = vector.extract_strided_slice %27 {offsets = [0, 0], sizes = [8, 64], strides = [1, 1]} : vector<8x256xf32> to vector<8x64xf32>
    %29 = vector.extract_strided_slice %27 {offsets = [0, 64], sizes = [8, 64], strides = [1, 1]} : vector<8x256xf32> to vector<8x64xf32>
    %30 = vector.extract_strided_slice %27 {offsets = [0, 128], sizes = [8, 64], strides = [1, 1]} : vector<8x256xf32> to vector<8x64xf32>
    %31 = vector.extract_strided_slice %27 {offsets = [0, 192], sizes = [8, 64], strides = [1, 1]} : vector<8x256xf32> to vector<8x64xf32>
    %32 = arith.mulf %29, %9 : vector<8x64xf32>
    %33 = arith.mulf %28, %30 : vector<8x64xf32>
    %34 = arith.addf %32, %33 : vector<8x64xf32>
    %35 = math.tanh %34 : vector<8x64xf32>
    %36 = arith.mulf %31, %35 : vector<8x64xf32>
    %cst_19 = arith.constant 0.000000e+00 : f32
    %37 = vector.broadcast %cst_19 : f32 to vector<8x64xf32>
    %38 = arith.maximumf %36, %37 : vector<8x64xf32>
    %cst_20 = arith.constant dense<0.000000e+00> : vector<8x1xf32>
    %39 = tpu.matmul %38, %6, %cst_20 {dimension_numbers = #tpu.dot_dimension_numbers<[1], [0], [0], [1], [0, 0, 1, 1], [], []>} : vector<8x64xf32>, vector<64x1xf32>, vector<8x1xf32> -> vector<8x1xf32>
    %40 = vector.broadcast %7 : vector<1x1xf32> to vector<8x1xf32>
    %41 = arith.addf %39, %40 : vector<8x1xf32>
    %cst_21 = arith.constant dense<0.000000e+00> : vector<8x8xf32>
    %42 = tpu.matmul %36, %4, %cst_21 {dimension_numbers = #tpu.dot_dimension_numbers<[1], [0], [0], [1], [0, 0, 1, 1], [], []>} : vector<8x64xf32>, vector<64x8xf32>, vector<8x8xf32> -> vector<8x8xf32>
    %43 = vector.broadcast %5 : vector<1x8xf32> to vector<8x8xf32>
    %44 = arith.addf %42, %43 : vector<8x8xf32>
    %cst_22 = arith.constant dense<0.000000e+00> : vector<8x256xf32>
    %45 = tpu.matmul %44, %1, %cst_22 {dimension_numbers = #tpu.dot_dimension_numbers<[1], [0], [0], [1], [0, 0, 1, 1], [], []>} : vector<8x8xf32>, vector<8x256xf32>, vector<8x256xf32> -> vector<8x256xf32>
    %cst_23 = arith.constant dense<0.000000e+00> : vector<8x256xf32>
    %46 = tpu.matmul %36, %2, %cst_23 {dimension_numbers = #tpu.dot_dimension_numbers<[1], [0], [0], [1], [0, 0, 1, 1], [], []>} : vector<8x64xf32>, vector<64x256xf32>, vector<8x256xf32> -> vector<8x256xf32>
    %47 = arith.addf %45, %46 : vector<8x256xf32>
    %48 = vector.broadcast %3 : vector<1x256xf32> to vector<8x256xf32>
    %49 = arith.addf %47, %48 : vector<8x256xf32>
    %50 = math.tanh %49 : vector<8x256xf32>
    %51 = arith.negf %49 : vector<8x256xf32>
    %52 = math.exp %51 : vector<8x256xf32>
    %cst_24 = arith.constant 1.000000e+00 : f32
    %53 = vector.broadcast %cst_24 : f32 to vector<8x256xf32>
    %54 = arith.addf %53, %52 : vector<8x256xf32>
    %55 = arith.divf %53, %54 : vector<8x256xf32>
    %56 = arith.select %15, %50, %55 : vector<8x256xi1>, vector<8x256xf32>
    %57 = vector.extract_strided_slice %56 {offsets = [0, 0], sizes = [8, 64], strides = [1, 1]} : vector<8x256xf32> to vector<8x64xf32>
    %58 = vector.extract_strided_slice %56 {offsets = [0, 64], sizes = [8, 64], strides = [1, 1]} : vector<8x256xf32> to vector<8x64xf32>
    %59 = vector.extract_strided_slice %56 {offsets = [0, 128], sizes = [8, 64], strides = [1, 1]} : vector<8x256xf32> to vector<8x64xf32>
    %60 = vector.extract_strided_slice %56 {offsets = [0, 192], sizes = [8, 64], strides = [1, 1]} : vector<8x256xf32> to vector<8x64xf32>
    %61 = arith.mulf %58, %34 : vector<8x64xf32>
    %62 = arith.mulf %57, %59 : vector<8x64xf32>
    %63 = arith.addf %61, %62 : vector<8x64xf32>
    %64 = math.tanh %63 : vector<8x64xf32>
    %65 = arith.mulf %60, %64 : vector<8x64xf32>
    %cst_25 = arith.constant 0.000000e+00 : f32
    %66 = vector.broadcast %cst_25 : f32 to vector<8x64xf32>
    %67 = arith.maximumf %65, %66 : vector<8x64xf32>
    %cst_26 = arith.constant dense<0.000000e+00> : vector<8x1xf32>
    %68 = tpu.matmul %67, %6, %cst_26 {dimension_numbers = #tpu.dot_dimension_numbers<[1], [0], [0], [1], [0, 0, 1, 1], [], []>} : vector<8x64xf32>, vector<64x1xf32>, vector<8x1xf32> -> vector<8x1xf32>
    %69 = vector.broadcast %7 : vector<1x1xf32> to vector<8x1xf32>
    %70 = arith.addf %68, %69 : vector<8x1xf32>
    %cst_27 = arith.constant dense<0.000000e+00> : vector<8x8xf32>
    %71 = tpu.matmul %65, %4, %cst_27 {dimension_numbers = #tpu.dot_dimension_numbers<[1], [0], [0], [1], [0, 0, 1, 1], [], []>} : vector<8x64xf32>, vector<64x8xf32>, vector<8x8xf32> -> vector<8x8xf32>
    %72 = vector.broadcast %5 : vector<1x8xf32> to vector<8x8xf32>
    %73 = arith.addf %71, %72 : vector<8x8xf32>
    %cst_28 = arith.constant dense<0.000000e+00> : vector<8x256xf32>
    %74 = tpu.matmul %73, %1, %cst_28 {dimension_numbers = #tpu.dot_dimension_numbers<[1], [0], [0], [1], [0, 0, 1, 1], [], []>} : vector<8x8xf32>, vector<8x256xf32>, vector<8x256xf32> -> vector<8x256xf32>
    %cst_29 = arith.constant dense<0.000000e+00> : vector<8x256xf32>
    %75 = tpu.matmul %65, %2, %cst_29 {dimension_numbers = #tpu.dot_dimension_numbers<[1], [0], [0], [1], [0, 0, 1, 1], [], []>} : vector<8x64xf32>, vector<64x256xf32>, vector<8x256xf32> -> vector<8x256xf32>
    %76 = arith.addf %74, %75 : vector<8x256xf32>
    %77 = vector.broadcast %3 : vector<1x256xf32> to vector<8x256xf32>
    %78 = arith.addf %76, %77 : vector<8x256xf32>
    %79 = math.tanh %78 : vector<8x256xf32>
    %80 = arith.negf %78 : vector<8x256xf32>
    %81 = math.exp %80 : vector<8x256xf32>
    %cst_30 = arith.constant 1.000000e+00 : f32
    %82 = vector.broadcast %cst_30 : f32 to vector<8x256xf32>
    %83 = arith.addf %82, %81 : vector<8x256xf32>
    %84 = arith.divf %82, %83 : vector<8x256xf32>
    %85 = arith.select %15, %79, %84 : vector<8x256xi1>, vector<8x256xf32>
    %86 = vector.extract_strided_slice %85 {offsets = [0, 0], sizes = [8, 64], strides = [1, 1]} : vector<8x256xf32> to vector<8x64xf32>
    %87 = vector.extract_strided_slice %85 {offsets = [0, 64], sizes = [8, 64], strides = [1, 1]} : vector<8x256xf32> to vector<8x64xf32>
    %88 = vector.extract_strided_slice %85 {offsets = [0, 128], sizes = [8, 64], strides = [1, 1]} : vector<8x256xf32> to vector<8x64xf32>
    %89 = vector.extract_strided_slice %85 {offsets = [0, 192], sizes = [8, 64], strides = [1, 1]} : vector<8x256xf32> to vector<8x64xf32>
    %90 = arith.mulf %87, %63 : vector<8x64xf32>
    %91 = arith.mulf %86, %88 : vector<8x64xf32>
    %92 = arith.addf %90, %91 : vector<8x64xf32>
    %93 = math.tanh %92 : vector<8x64xf32>
    %94 = arith.mulf %89, %93 : vector<8x64xf32>
    %cst_31 = arith.constant 0.000000e+00 : f32
    %95 = vector.broadcast %cst_31 : f32 to vector<8x64xf32>
    %96 = arith.maximumf %94, %95 : vector<8x64xf32>
    %cst_32 = arith.constant dense<0.000000e+00> : vector<8x1xf32>
    %97 = tpu.matmul %96, %6, %cst_32 {dimension_numbers = #tpu.dot_dimension_numbers<[1], [0], [0], [1], [0, 0, 1, 1], [], []>} : vector<8x64xf32>, vector<64x1xf32>, vector<8x1xf32> -> vector<8x1xf32>
    %98 = vector.broadcast %7 : vector<1x1xf32> to vector<8x1xf32>
    %99 = arith.addf %97, %98 : vector<8x1xf32>
    %cst_33 = arith.constant dense<0.000000e+00> : vector<8x8xf32>
    %100 = tpu.matmul %94, %4, %cst_33 {dimension_numbers = #tpu.dot_dimension_numbers<[1], [0], [0], [1], [0, 0, 1, 1], [], []>} : vector<8x64xf32>, vector<64x8xf32>, vector<8x8xf32> -> vector<8x8xf32>
    %101 = vector.broadcast %5 : vector<1x8xf32> to vector<8x8xf32>
    %102 = arith.addf %100, %101 : vector<8x8xf32>
    %cst_34 = arith.constant dense<0.000000e+00> : vector<8x256xf32>
    %103 = tpu.matmul %102, %1, %cst_34 {dimension_numbers = #tpu.dot_dimension_numbers<[1], [0], [0], [1], [0, 0, 1, 1], [], []>} : vector<8x8xf32>, vector<8x256xf32>, vector<8x256xf32> -> vector<8x256xf32>
    %cst_35 = arith.constant dense<0.000000e+00> : vector<8x256xf32>
    %104 = tpu.matmul %94, %2, %cst_35 {dimension_numbers = #tpu.dot_dimension_numbers<[1], [0], [0], [1], [0, 0, 1, 1], [], []>} : vector<8x64xf32>, vector<64x256xf32>, vector<8x256xf32> -> vector<8x256xf32>
    %105 = arith.addf %103, %104 : vector<8x256xf32>
    %106 = vector.broadcast %3 : vector<1x256xf32> to vector<8x256xf32>
    %107 = arith.addf %105, %106 : vector<8x256xf32>
    %108 = math.tanh %107 : vector<8x256xf32>
    %109 = arith.negf %107 : vector<8x256xf32>
    %110 = math.exp %109 : vector<8x256xf32>
    %cst_36 = arith.constant 1.000000e+00 : f32
    %111 = vector.broadcast %cst_36 : f32 to vector<8x256xf32>
    %112 = arith.addf %111, %110 : vector<8x256xf32>
    %113 = arith.divf %111, %112 : vector<8x256xf32>
    %114 = arith.select %15, %108, %113 : vector<8x256xi1>, vector<8x256xf32>
    %115 = vector.extract_strided_slice %114 {offsets = [0, 0], sizes = [8, 64], strides = [1, 1]} : vector<8x256xf32> to vector<8x64xf32>
    %116 = vector.extract_strided_slice %114 {offsets = [0, 64], sizes = [8, 64], strides = [1, 1]} : vector<8x256xf32> to vector<8x64xf32>
    %117 = vector.extract_strided_slice %114 {offsets = [0, 128], sizes = [8, 64], strides = [1, 1]} : vector<8x256xf32> to vector<8x64xf32>
    %118 = vector.extract_strided_slice %114 {offsets = [0, 192], sizes = [8, 64], strides = [1, 1]} : vector<8x256xf32> to vector<8x64xf32>
    %119 = arith.mulf %116, %92 : vector<8x64xf32>
    %120 = arith.mulf %115, %117 : vector<8x64xf32>
    %121 = arith.addf %119, %120 : vector<8x64xf32>
    %122 = math.tanh %121 : vector<8x64xf32>
    %123 = arith.mulf %118, %122 : vector<8x64xf32>
    %cst_37 = arith.constant 0.000000e+00 : f32
    %124 = vector.broadcast %cst_37 : f32 to vector<8x64xf32>
    %125 = arith.maximumf %123, %124 : vector<8x64xf32>
    %cst_38 = arith.constant dense<0.000000e+00> : vector<8x1xf32>
    %126 = tpu.matmul %125, %6, %cst_38 {dimension_numbers = #tpu.dot_dimension_numbers<[1], [0], [0], [1], [0, 0, 1, 1], [], []>} : vector<8x64xf32>, vector<64x1xf32>, vector<8x1xf32> -> vector<8x1xf32>
    %127 = vector.broadcast %7 : vector<1x1xf32> to vector<8x1xf32>
    %128 = arith.addf %126, %127 : vector<8x1xf32>
    %cst_39 = arith.constant dense<0.000000e+00> : vector<8x8xf32>
    %129 = tpu.matmul %123, %4, %cst_39 {dimension_numbers = #tpu.dot_dimension_numbers<[1], [0], [0], [1], [0, 0, 1, 1], [], []>} : vector<8x64xf32>, vector<64x8xf32>, vector<8x8xf32> -> vector<8x8xf32>
    %130 = vector.broadcast %5 : vector<1x8xf32> to vector<8x8xf32>
    %131 = arith.addf %129, %130 : vector<8x8xf32>
    %cst_40 = arith.constant dense<0.000000e+00> : vector<8x256xf32>
    %132 = tpu.matmul %131, %1, %cst_40 {dimension_numbers = #tpu.dot_dimension_numbers<[1], [0], [0], [1], [0, 0, 1, 1], [], []>} : vector<8x8xf32>, vector<8x256xf32>, vector<8x256xf32> -> vector<8x256xf32>
    %cst_41 = arith.constant dense<0.000000e+00> : vector<8x256xf32>
    %133 = tpu.matmul %123, %2, %cst_41 {dimension_numbers = #tpu.dot_dimension_numbers<[1], [0], [0], [1], [0, 0, 1, 1], [], []>} : vector<8x64xf32>, vector<64x256xf32>, vector<8x256xf32> -> vector<8x256xf32>
    %134 = arith.addf %132, %133 : vector<8x256xf32>
    %135 = vector.broadcast %3 : vector<1x256xf32> to vector<8x256xf32>
    %136 = arith.addf %134, %135 : vector<8x256xf32>
    %137 = math.tanh %136 : vector<8x256xf32>
    %138 = arith.negf %136 : vector<8x256xf32>
    %139 = math.exp %138 : vector<8x256xf32>
    %cst_42 = arith.constant 1.000000e+00 : f32
    %140 = vector.broadcast %cst_42 : f32 to vector<8x256xf32>
    %141 = arith.addf %140, %139 : vector<8x256xf32>
    %142 = arith.divf %140, %141 : vector<8x256xf32>
    %143 = arith.select %15, %137, %142 : vector<8x256xi1>, vector<8x256xf32>
    %144 = vector.extract_strided_slice %143 {offsets = [0, 0], sizes = [8, 64], strides = [1, 1]} : vector<8x256xf32> to vector<8x64xf32>
    %145 = vector.extract_strided_slice %143 {offsets = [0, 64], sizes = [8, 64], strides = [1, 1]} : vector<8x256xf32> to vector<8x64xf32>
    %146 = vector.extract_strided_slice %143 {offsets = [0, 128], sizes = [8, 64], strides = [1, 1]} : vector<8x256xf32> to vector<8x64xf32>
    %147 = vector.extract_strided_slice %143 {offsets = [0, 192], sizes = [8, 64], strides = [1, 1]} : vector<8x256xf32> to vector<8x64xf32>
    %148 = arith.mulf %145, %121 : vector<8x64xf32>
    %149 = arith.mulf %144, %146 : vector<8x64xf32>
    %150 = arith.addf %148, %149 : vector<8x64xf32>
    %151 = math.tanh %150 : vector<8x64xf32>
    %152 = arith.mulf %147, %151 : vector<8x64xf32>
    %cst_43 = arith.constant 0.000000e+00 : f32
    %153 = vector.broadcast %cst_43 : f32 to vector<8x64xf32>
    %154 = arith.maximumf %152, %153 : vector<8x64xf32>
    %cst_44 = arith.constant dense<0.000000e+00> : vector<8x1xf32>
    %155 = tpu.matmul %154, %6, %cst_44 {dimension_numbers = #tpu.dot_dimension_numbers<[1], [0], [0], [1], [0, 0, 1, 1], [], []>} : vector<8x64xf32>, vector<64x1xf32>, vector<8x1xf32> -> vector<8x1xf32>
    %156 = vector.broadcast %7 : vector<1x1xf32> to vector<8x1xf32>
    %157 = arith.addf %155, %156 : vector<8x1xf32>
    %cst_45 = arith.constant dense<0.000000e+00> : vector<8x8xf32>
    %158 = tpu.matmul %152, %4, %cst_45 {dimension_numbers = #tpu.dot_dimension_numbers<[1], [0], [0], [1], [0, 0, 1, 1], [], []>} : vector<8x64xf32>, vector<64x8xf32>, vector<8x8xf32> -> vector<8x8xf32>
    %159 = vector.broadcast %5 : vector<1x8xf32> to vector<8x8xf32>
    %160 = arith.addf %158, %159 : vector<8x8xf32>
    %cst_46 = arith.constant dense<0.000000e+00> : vector<8x256xf32>
    %161 = tpu.matmul %160, %1, %cst_46 {dimension_numbers = #tpu.dot_dimension_numbers<[1], [0], [0], [1], [0, 0, 1, 1], [], []>} : vector<8x8xf32>, vector<8x256xf32>, vector<8x256xf32> -> vector<8x256xf32>
    %cst_47 = arith.constant dense<0.000000e+00> : vector<8x256xf32>
    %162 = tpu.matmul %152, %2, %cst_47 {dimension_numbers = #tpu.dot_dimension_numbers<[1], [0], [0], [1], [0, 0, 1, 1], [], []>} : vector<8x64xf32>, vector<64x256xf32>, vector<8x256xf32> -> vector<8x256xf32>
    %163 = arith.addf %161, %162 : vector<8x256xf32>
    %164 = vector.broadcast %3 : vector<1x256xf32> to vector<8x256xf32>
    %165 = arith.addf %163, %164 : vector<8x256xf32>
    %166 = math.tanh %165 : vector<8x256xf32>
    %167 = arith.negf %165 : vector<8x256xf32>
    %168 = math.exp %167 : vector<8x256xf32>
    %cst_48 = arith.constant 1.000000e+00 : f32
    %169 = vector.broadcast %cst_48 : f32 to vector<8x256xf32>
    %170 = arith.addf %169, %168 : vector<8x256xf32>
    %171 = arith.divf %169, %170 : vector<8x256xf32>
    %172 = arith.select %15, %166, %171 : vector<8x256xi1>, vector<8x256xf32>
    %173 = vector.extract_strided_slice %172 {offsets = [0, 0], sizes = [8, 64], strides = [1, 1]} : vector<8x256xf32> to vector<8x64xf32>
    %174 = vector.extract_strided_slice %172 {offsets = [0, 64], sizes = [8, 64], strides = [1, 1]} : vector<8x256xf32> to vector<8x64xf32>
    %175 = vector.extract_strided_slice %172 {offsets = [0, 128], sizes = [8, 64], strides = [1, 1]} : vector<8x256xf32> to vector<8x64xf32>
    %176 = vector.extract_strided_slice %172 {offsets = [0, 192], sizes = [8, 64], strides = [1, 1]} : vector<8x256xf32> to vector<8x64xf32>
    %177 = arith.mulf %174, %150 : vector<8x64xf32>
    %178 = arith.mulf %173, %175 : vector<8x64xf32>
    %179 = arith.addf %177, %178 : vector<8x64xf32>
    %180 = math.tanh %179 : vector<8x64xf32>
    %181 = arith.mulf %176, %180 : vector<8x64xf32>
    %cst_49 = arith.constant 0.000000e+00 : f32
    %182 = vector.broadcast %cst_49 : f32 to vector<8x64xf32>
    %183 = arith.maximumf %181, %182 : vector<8x64xf32>
    %cst_50 = arith.constant dense<0.000000e+00> : vector<8x1xf32>
    %184 = tpu.matmul %183, %6, %cst_50 {dimension_numbers = #tpu.dot_dimension_numbers<[1], [0], [0], [1], [0, 0, 1, 1], [], []>} : vector<8x64xf32>, vector<64x1xf32>, vector<8x1xf32> -> vector<8x1xf32>
    %185 = vector.broadcast %7 : vector<1x1xf32> to vector<8x1xf32>
    %186 = arith.addf %184, %185 : vector<8x1xf32>
    %cst_51 = arith.constant dense<0.000000e+00> : vector<8x8xf32>
    %187 = tpu.matmul %181, %4, %cst_51 {dimension_numbers = #tpu.dot_dimension_numbers<[1], [0], [0], [1], [0, 0, 1, 1], [], []>} : vector<8x64xf32>, vector<64x8xf32>, vector<8x8xf32> -> vector<8x8xf32>
    %188 = vector.broadcast %5 : vector<1x8xf32> to vector<8x8xf32>
    %189 = arith.addf %187, %188 : vector<8x8xf32>
    %cst_52 = arith.constant dense<0.000000e+00> : vector<8x256xf32>
    %190 = tpu.matmul %189, %1, %cst_52 {dimension_numbers = #tpu.dot_dimension_numbers<[1], [0], [0], [1], [0, 0, 1, 1], [], []>} : vector<8x8xf32>, vector<8x256xf32>, vector<8x256xf32> -> vector<8x256xf32>
    %cst_53 = arith.constant dense<0.000000e+00> : vector<8x256xf32>
    %191 = tpu.matmul %181, %2, %cst_53 {dimension_numbers = #tpu.dot_dimension_numbers<[1], [0], [0], [1], [0, 0, 1, 1], [], []>} : vector<8x64xf32>, vector<64x256xf32>, vector<8x256xf32> -> vector<8x256xf32>
    %192 = arith.addf %190, %191 : vector<8x256xf32>
    %193 = vector.broadcast %3 : vector<1x256xf32> to vector<8x256xf32>
    %194 = arith.addf %192, %193 : vector<8x256xf32>
    %195 = math.tanh %194 : vector<8x256xf32>
    %196 = arith.negf %194 : vector<8x256xf32>
    %197 = math.exp %196 : vector<8x256xf32>
    %cst_54 = arith.constant 1.000000e+00 : f32
    %198 = vector.broadcast %cst_54 : f32 to vector<8x256xf32>
    %199 = arith.addf %198, %197 : vector<8x256xf32>
    %200 = arith.divf %198, %199 : vector<8x256xf32>
    %201 = arith.select %15, %195, %200 : vector<8x256xi1>, vector<8x256xf32>
    %202 = vector.extract_strided_slice %201 {offsets = [0, 0], sizes = [8, 64], strides = [1, 1]} : vector<8x256xf32> to vector<8x64xf32>
    %203 = vector.extract_strided_slice %201 {offsets = [0, 64], sizes = [8, 64], strides = [1, 1]} : vector<8x256xf32> to vector<8x64xf32>
    %204 = vector.extract_strided_slice %201 {offsets = [0, 128], sizes = [8, 64], strides = [1, 1]} : vector<8x256xf32> to vector<8x64xf32>
    %205 = vector.extract_strided_slice %201 {offsets = [0, 192], sizes = [8, 64], strides = [1, 1]} : vector<8x256xf32> to vector<8x64xf32>
    %206 = arith.mulf %203, %179 : vector<8x64xf32>
    %207 = arith.mulf %202, %204 : vector<8x64xf32>
    %208 = arith.addf %206, %207 : vector<8x64xf32>
    %209 = math.tanh %208 : vector<8x64xf32>
    %210 = arith.mulf %205, %209 : vector<8x64xf32>
    %cst_55 = arith.constant 0.000000e+00 : f32
    %211 = vector.broadcast %cst_55 : f32 to vector<8x64xf32>
    %212 = arith.maximumf %210, %211 : vector<8x64xf32>
    %cst_56 = arith.constant dense<0.000000e+00> : vector<8x1xf32>
    %213 = tpu.matmul %212, %6, %cst_56 {dimension_numbers = #tpu.dot_dimension_numbers<[1], [0], [0], [1], [0, 0, 1, 1], [], []>} : vector<8x64xf32>, vector<64x1xf32>, vector<8x1xf32> -> vector<8x1xf32>
    %214 = vector.broadcast %7 : vector<1x1xf32> to vector<8x1xf32>
    %215 = arith.addf %213, %214 : vector<8x1xf32>
    %cst_57 = arith.constant dense<0.000000e+00> : vector<8x8xf32>
    %216 = tpu.matmul %210, %4, %cst_57 {dimension_numbers = #tpu.dot_dimension_numbers<[1], [0], [0], [1], [0, 0, 1, 1], [], []>} : vector<8x64xf32>, vector<64x8xf32>, vector<8x8xf32> -> vector<8x8xf32>
    %217 = vector.broadcast %5 : vector<1x8xf32> to vector<8x8xf32>
    %218 = arith.addf %216, %217 : vector<8x8xf32>
    %cst_58 = arith.constant dense<0.000000e+00> : vector<8x256xf32>
    %219 = tpu.matmul %218, %1, %cst_58 {dimension_numbers = #tpu.dot_dimension_numbers<[1], [0], [0], [1], [0, 0, 1, 1], [], []>} : vector<8x8xf32>, vector<8x256xf32>, vector<8x256xf32> -> vector<8x256xf32>
    %cst_59 = arith.constant dense<0.000000e+00> : vector<8x256xf32>
    %220 = tpu.matmul %210, %2, %cst_59 {dimension_numbers = #tpu.dot_dimension_numbers<[1], [0], [0], [1], [0, 0, 1, 1], [], []>} : vector<8x64xf32>, vector<64x256xf32>, vector<8x256xf32> -> vector<8x256xf32>
    %221 = arith.addf %219, %220 : vector<8x256xf32>
    %222 = vector.broadcast %3 : vector<1x256xf32> to vector<8x256xf32>
    %223 = arith.addf %221, %222 : vector<8x256xf32>
    %224 = math.tanh %223 : vector<8x256xf32>
    %225 = arith.negf %223 : vector<8x256xf32>
    %226 = math.exp %225 : vector<8x256xf32>
    %cst_60 = arith.constant 1.000000e+00 : f32
    %227 = vector.broadcast %cst_60 : f32 to vector<8x256xf32>
    %228 = arith.addf %227, %226 : vector<8x256xf32>
    %229 = arith.divf %227, %228 : vector<8x256xf32>
    %230 = arith.select %15, %224, %229 : vector<8x256xi1>, vector<8x256xf32>
    %231 = vector.extract_strided_slice %230 {offsets = [0, 0], sizes = [8, 64], strides = [1, 1]} : vector<8x256xf32> to vector<8x64xf32>
    %232 = vector.extract_strided_slice %230 {offsets = [0, 64], sizes = [8, 64], strides = [1, 1]} : vector<8x256xf32> to vector<8x64xf32>
    %233 = vector.extract_strided_slice %230 {offsets = [0, 128], sizes = [8, 64], strides = [1, 1]} : vector<8x256xf32> to vector<8x64xf32>
    %234 = vector.extract_strided_slice %230 {offsets = [0, 192], sizes = [8, 64], strides = [1, 1]} : vector<8x256xf32> to vector<8x64xf32>
    %235 = arith.mulf %232, %208 : vector<8x64xf32>
    %236 = arith.mulf %231, %233 : vector<8x64xf32>
    %237 = arith.addf %235, %236 : vector<8x64xf32>
    %238 = math.tanh %237 : vector<8x64xf32>
    %239 = arith.mulf %234, %238 : vector<8x64xf32>
    %cst_61 = arith.constant 0.000000e+00 : f32
    %240 = vector.broadcast %cst_61 : f32 to vector<8x64xf32>
    %241 = arith.maximumf %239, %240 : vector<8x64xf32>
    %cst_62 = arith.constant dense<0.000000e+00> : vector<8x1xf32>
    %242 = tpu.matmul %241, %6, %cst_62 {dimension_numbers = #tpu.dot_dimension_numbers<[1], [0], [0], [1], [0, 0, 1, 1], [], []>} : vector<8x64xf32>, vector<64x1xf32>, vector<8x1xf32> -> vector<8x1xf32>
    %243 = vector.broadcast %7 : vector<1x1xf32> to vector<8x1xf32>
    %244 = arith.addf %242, %243 : vector<8x1xf32>
    %245 = tpu.concatenate %41, %70, %99, %128, %157, %186, %215, %244 in 1 : vector<8x1xf32>, vector<8x1xf32>, vector<8x1xf32>, vector<8x1xf32>, vector<8x1xf32>, vector<8x1xf32>, vector<8x1xf32>, vector<8x1xf32> -> vector<8x8xf32>
    %c0_63 = arith.constant 0 : index
    %c0_64 = arith.constant 0 : index
    %246 = vector.load %arg8[%c0_63, %c0_64] : memref<8x8xf32, #tpu.memory_space<vmem>>, vector<8x8xf32>
    tpu.vector_store %arg8[%c0_63, %c0_64], %245 {strides = array<i32>} : memref<8x8xf32, #tpu.memory_space<vmem>>, vector<8x8xf32>,
    return
  }
}

</mosaic_0001>

<bundles_post_ra>
// kernel: tpu_custom_call.1
= control target key start
LH: loop header
LB: loop body
LE: loop exit
PB: predicated region body
PF: predicated region fallthrough
CT: control target
= control target key end

     0   :  { %s2672_s0 = inlined_call_operand.vmem [shape: f32[8,8], index: 0, kind: input, shape index: {}]   ;;  %s2673_s1 = inlined_call_operand.hbm [shape: f32[8,256], index: 1, kind: input, shape index: {}]   ;;  %s2674_s2 = inlined_call_operand.vmem [shape: f32[64,256], index: 2, kind: input, shape index: {}]   ;;  %s2675_s3 = inlined_call_operand.vmem [shape: f32[1,256], index: 3, kind: input, shape index: {}]   ;;  %s2676_s4 = inlined_call_operand.vmem [shape: f32[64,8], index: 4, kind: input, shape index: {}]   ;;  %s2677_s5 = inlined_call_operand.vmem [shape: f32[1,8], index: 5, kind: input, shape index: {}]   ;;  %s2678_s6 = inlined_call_operand.vmem [shape: f32[64,1], index: 6, kind: input, shape index: {}]   ;;  %s2679_s7 = inlined_call_operand.<no memory space> [shape: f32[1,1], index: 7, kind: input, shape index: {}]   ;;  %s2680_s8 = inlined_call_operand.hbm [shape: f32[8,8], index: 8, kind: output, shape index: {}]  }
   0x1   :  { %v13_v0 = vstv %s2679_s7 }
   0x2   :  { %14 = vst [vmem:[#allocation2] sm:$0x1] %v13_v0 }
   0x3   :  { %15 = vsyncpa [#allocation4], 0 }
   0x4   :  { %16 = vsyncpa [#allocation5], 0  ;;  %s24_s9 = sshll.u32 %s2673_s1, 4  ;;  %s1889_s10 = smov [#allocation3]   ;;  %s25_s9 = int_to_ptr.hbm [resolvable:$true] %s24_s9 }
   0x5   :  { %s26_s11 = sshll.u32 %s1889_s10, 4  ;;  %s27_s11 = int_to_ptr.vmem [resolvable:$true] %s26_s11 }
   0x6   :  { %29 = dma.hbm_to_vmem [thread:$0]  %s25_s9, 256, %s27_s11, [#allocation4]  }
   0x7   :  { %1885 = dma.done.wait [#allocation4], 256  }
   0x8   :  { %1886 = vsyncadd [#allocation4], 4294967040  ;;  %v1954_v1 = vld [vmem:[%s2674_s2 + $0x70] sm:$0xff]  ;;  %v1959_v2 = vld [vmem:[%s2674_s2 + $0x78] sm:$0xff]  ;;  %vm137_vm0 = vcmask 64512   ;;  %v1890_v20 = vmov 0.0   ;;  %v84_v38 = vlaneseq }
   0x9   :  { %v1964_v3 = vld [vmem:[%s2674_s2 + $0x60] sm:$0xff]  ;;  %105 = vmatpush.msra.mxu0 %v1954_v1  ;;  %125 = vmatpush.msra.mxu1 %v1959_v2  ;;  %v1971_v4 = vld [vmem:[%s2674_s2 + $0x68] sm:$0xff]  ;;  %v1976_v5 = vld [vmem:[%s2674_s2 + $0x50] sm:$0xff]  ;;  %vm93_vm10 = vcmask 523264   ;;  %s1893_s26 = smov 4   ;;  %s1894_s27 = smov 2  }
   0xa   :  { %v1981_v6 = vld [vmem:[%s2674_s2 + $0x58] sm:$0xff]  ;;  %v1985_v7 = vld [vmem:[#allocation3] sm:$0xff]  ;;  %v1987_v8 = vld [vmem:[#allocation3 + $0x8] sm:$0xff]  ;;  %v85_v40 = vand.u32 127, %v84_v38  ;;  %s1896_s28 = smov 3   ;;  %s1897_s29 = smov 6  }
   0xb   :  { %106 = vmatpush.msra.mxu0 %v1964_v3  ;;  %126 = vmatpush.msra.mxu1 %v1971_v4  ;;  %v1992_v9 = vld [vmem:[%s2674_s2 + $0x40] sm:$0xff]  ;;  %v1997_v10 = vld [vmem:[%s2674_s2 + $0x48] sm:$0xff]  ;;  %v2009_v12 = vld [vmem:[%s2674_s2 + $0x30] sm:$0xff]  ;;  %s1898_s30 = smov 7   ;;  %s1630_s11 = sshll.u32 %s2680_s8, 4  ;;  %s1631_s11 = int_to_ptr.hbm [resolvable:$true] %s1630_s11 }
   0xc   :  { %156 = vmatpush.msra.mxu2 %v1985_v7  ;;  %176 = vmatpush.msra.mxu3 %v1987_v8  ;;  %v46_v11 = vld [vmem:[%s2672_s0] sm:$0xff]  ;;  %v2014_v13 = vld [vmem:[%s2674_s2 + $0x38] sm:$0xff]  ;;  %v2028_v15 = vld [vmem:[%s2674_s2 + $0x28] sm:$0xff]  ;;  %v2099_v45 = vadd.s32 128, %v85_v40 }
   0xd   :  { %107 = vmatpush.msra.mxu0 %v1976_v5  ;;  %127 = vmatpush.msra.mxu1 %v1981_v6  ;;  %v2023_v14 = vld [vmem:[%s2674_s2 + $0x20] sm:$0xff]  ;;  %v2035_v16 = vld [vmem:[%s2674_s2 + $0x10] sm:$0xff]  ;;  %v2040_v17 = vld [vmem:[%s2674_s2 + $0x18] sm:$0xff] }
   0xe   :  { %1640 = vmatmul.msk.f32.vlgmr.msra.gmra.mxu2 %vm137_vm0, %v46_v11  ;;  %1641 = vmatmul.msk.f32.vlgmr.msra.gmra.mxu3 %vm137_vm0, %v46_v11  ;;  %v2047_v18 = vld [vmem:[%s2674_s2] sm:$0xff]  ;;  %v2052_v19 = vld [vmem:[%s2674_s2 + $0x8] sm:$0xff]  ;;  %vm90_vm6 = vcmp.lt.s32.totalorder %v2099_v45, 192  ;;  %v2108_v0 = vld [vmem:[%s2678_s6 + $0x38] sm:$0xff] }
   0xf   :  { %108 = vmatpush.msra.mxu0 %v1992_v9  ;;  %128 = vmatpush.msra.mxu1 %v1997_v10  ;;  %v65_v21 = vld [vmem:[%s2675_s3] sm:$0x3]  ;;  %s1891_s3 = smov 64   ;;  %v2113_v11 = vld [vmem:[%s2678_s6 + $0x30] sm:$0xff]  ;;  %v2192_v38 = vld [vmem:[%s2676_s4 + $0x18] sm:$0xff] }
  0x10   :  { %v2093_v24 = vperm.slane %v65_v21, 0  ;;  %v2095_v25 = vperm.slane %v65_v21, 1  ;;  %256 = vmatpush.msrb.mxu2 %v2108_v0  ;;  %v2125_v21 = vld [vmem:[%s2678_s6 + $0x20] sm:$0xff]  ;;  %v2204_v40 = vld [vmem:[%s2676_s4 + $0x8] sm:$0xff] }
  0x11   :  { %109 = vmatpush.msra.mxu0 %v2009_v12  ;;  %129 = vmatpush.msra.mxu1 %v2014_v13 }
  0x12   :  { %257 = vmatpush.msrb.mxu2 %v2113_v11 }
  0x13   :  { %110 = vmatpush.msra.mxu0 %v2023_v14  ;;  %130 = vmatpush.msra.mxu1 %v2028_v15 }
  0x15   :  { %111 = vmatpush.msra.mxu0 %v2035_v16  ;;  %131 = vmatpush.msra.mxu1 %v2040_v17 }
  0x17   :  { %112 = vmatpush.msra.mxu0 %v2047_v18  ;;  %132 = vmatpush.msra.mxu1 %v2052_v19 }
  0x18   :  { %113 = vmatmul.f32.vlgmr.msra.gmra.mxu0 %v1890_v20  ;;  %133 = vmatmul.f32.vlgmr.msra.gmra.mxu1 %v1890_v20  ;;  %v2119_v20 = vld [vmem:[%s2678_s6 + $0x28] sm:$0xff] }
  0x19   :  { %304 = vmatpush.msrb.mxu0 %v1954_v1  ;;  %324 = vmatpush.msrb.mxu1 %v1959_v2 }
  0x1a   :  { %258 = vmatpush.msrb.mxu2 %v2119_v20 }
  0x1b   :  { %305 = vmatpush.msrb.mxu0 %v1964_v3  ;;  %325 = vmatpush.msrb.mxu1 %v1971_v4 }
  0x1c   :  { %259 = vmatpush.msrb.mxu2 %v2125_v21 }
  0x1d   :  { %306 = vmatpush.msrb.mxu0 %v1976_v5  ;;  %326 = vmatpush.msrb.mxu1 %v1981_v6 }
  0x1f   :  { %307 = vmatpush.msrb.mxu0 %v1992_v9  ;;  %327 = vmatpush.msrb.mxu1 %v1997_v10 }
  0x21   :  { %308 = vmatpush.msrb.mxu0 %v2009_v12  ;;  %328 = vmatpush.msrb.mxu1 %v2014_v13 }
  0x23   :  { %309 = vmatpush.msrb.mxu0 %v2023_v14  ;;  %329 = vmatpush.msrb.mxu1 %v2028_v15 }
  0x25   :  { %310 = vmatpush.msrb.mxu0 %v2035_v16  ;;  %330 = vmatpush.msrb.mxu1 %v2040_v17 }
  0x27   :  { %311 = vmatpush.msrb.mxu0 %v2047_v18  ;;  %331 = vmatpush.msrb.mxu1 %v2052_v19 }
  0x29   :  { %491 = vmatpush.msra.mxu0 %v1954_v1  ;;  %511 = vmatpush.msra.mxu1 %v1959_v2 }
  0x2b   :  { %492 = vmatpush.msra.mxu0 %v1964_v3  ;;  %512 = vmatpush.msra.mxu1 %v1971_v4 }
  0x2d   :  { %493 = vmatpush.msra.mxu0 %v1976_v5  ;;  %513 = vmatpush.msra.mxu1 %v1981_v6 }
  0x2f   :  { %494 = vmatpush.msra.mxu0 %v1992_v9  ;;  %514 = vmatpush.msra.mxu1 %v1997_v10 }
  0x31   :  { %495 = vmatpush.msra.mxu0 %v2009_v12  ;;  %515 = vmatpush.msra.mxu1 %v2014_v13 }
  0x33   :  { %496 = vmatpush.msra.mxu0 %v2023_v14  ;;  %516 = vmatpush.msra.mxu1 %v2028_v15 }
  0x35   :  { %497 = vmatpush.msra.mxu0 %v2035_v16  ;;  %517 = vmatpush.msra.mxu1 %v2040_v17 }
  0x37   :  { %498 = vmatpush.msra.mxu0 %v2047_v18  ;;  %518 = vmatpush.msra.mxu1 %v2052_v19 }
  0x91   :  { %v158_v22 = vpop.f32.mrf.mxu2  ;;  %v178_v23 = vpop.f32.mrf.mxu3 }
  0x95   :  { %v114_v26 = vpop.f32.mrf.mxu0  ;;  %v134_v27 = vpop.f32.mrf.mxu1 }
  0x96   :  { %v159_v28 = vadd.f32 %v158_v22, %v114_v26  ;;  %v179_v29 = vadd.f32 %v178_v23, %v134_v27  ;;  %v2131_v22 = vld [vmem:[%s2678_s6 + $0x18] sm:$0xff]  ;;  %v2137_v23 = vld [vmem:[%s2678_s6 + $0x10] sm:$0xff]  ;;  %v2143_v26 = vld [vmem:[%s2678_s6 + $0x8] sm:$0xff] }
  0x97   :  { %260 = vmatpush.msrb.mxu2 %v2131_v22  ;;  %v2149_v27 = vld [vmem:[%s2678_s6] sm:$0xff] }
  0x98   :  { %v186_v30 = vadd.f32 %v2093_v24, %v159_v28  ;;  %v187_v31 = vadd.f32 %v2095_v25, %v179_v29 }
  0x99   :  { %261 = vmatpush.msrb.mxu2 %v2137_v23 }
  0x9a   :  { %v1642_v32 = vmul.f32 -1.442695, %v186_v30  ;;  %v1643_v33 = vmul.f32 -1.442695, %v187_v31 }
  0x9b   :  { %262 = vmatpush.msrb.mxu2 %v2143_v26 }
  0x9c   :  { %1714 = vpow2.f32 %v1642_v32 }
  0x9d   :  { %1716 = vpow2.f32 %v1643_v33  ;;  %263 = vmatpush.msrb.mxu2 %v2149_v27 }
  0x9f   :  { %446 = vmatpush.msra.mxu2 %v2108_v0 }
  0xa1   :  { %447 = vmatpush.msra.mxu2 %v2113_v11 }
  0xa2   :  { %v1715_v34 = vpop.eup %1714 }
  0xa3   :  { %v1717_v35 = vpop.eup %1716  ;;  %v196_v36 = vadd.f32 1.0, %v1715_v34  ;;  %448 = vmatpush.msra.mxu2 %v2119_v20  ;;  %v2169_v34 = vld [vmem:[%s2676_s4 + $0x38] sm:$0xff] }
  0xa4   :  { %v197_v37 = vadd.f32 1.0, %v1717_v35  ;;  %v2174_v35 = vld [vmem:[%s2676_s4 + $0x30] sm:$0xff]  ;;  %284 = vmatpush.msrb.mxu3 %v2169_v34 }
  0xa5   :  { %1718 = vrcp.f32 %v196_v36  ;;  %v209_v46 = vand.u32 2147483648, %v196_v36  ;;  %v207_v49 = vand.u32 2147483647, %v196_v36  ;;  %vm203_vm3 = vweird.f32 %v196_v36  ;;  %449 = vmatpush.msra.mxu2 %v2125_v21 }
  0xa6   :  { %1720 = vrcp.f32 %v197_v37  ;;  %v224_v50 = vand.u32 2147483648, %v197_v37  ;;  %v222_v52 = vand.u32 2147483647, %v197_v37  ;;  %vm218_vm5 = vweird.f32 %v197_v37  ;;  %285 = vmatpush.msrb.mxu3 %v2174_v35 }
  0xa7   :  { %1722 = vtanh.f32 %v187_v31  ;;  %v210_v54 = vor.u32 1.1754944e-38, %v209_v46  ;;  %vm208_vm7 = vcmp.eq.f32.partialorder %v207_v49, 8.507059e+37  ;;  %450 = vmatpush.msra.mxu2 %v2131_v22 }
  0xa8   :  { %v225_v57 = vor.u32 1.1754944e-38, %v224_v50  ;;  %vm223_vm9 = vcmp.eq.f32.partialorder %v222_v52, 8.507059e+37 }
  0xa9   :  { %451 = vmatpush.msra.mxu2 %v2137_v23 }
  0xab   :  { %v1719_v39 = vpop.eup %1718  ;;  %452 = vmatpush.msra.mxu2 %v2143_v26 }
  0xac   :  { %v1721_v41 = vpop.eup %1720  ;;  %v199_v42 = vmul.f32 %v1719_v39, %v196_v36  ;;  %vm204_vm1 = vweird.f32 %v1719_v39  ;;  %v2180_v36 = vld [vmem:[%s2676_s4 + $0x28] sm:$0xff] }
  0xad   :  { %v214_v43 = vmul.f32 %v1721_v41, %v197_v37  ;;  %vm219_vm2 = vweird.f32 %v1721_v41  ;;  %vm205_vm4 = vmor %vm203_vm3, %vm204_vm1  ;;  %v1723_v58 = vpop.eup %1722  ;;  %453 = vmatpush.msra.mxu2 %v2149_v27  ;;  %v2186_v37 = vld [vmem:[%s2676_s4 + $0x20] sm:$0xff]  ;;  %286 = vmatpush.msrb.mxu3 %v2180_v36 }
  0xae   :  { %v200_v44 = vsub.f32 1.0, %v199_v42  ;;  %vm220_vm8 = vmor %vm218_vm5, %vm219_vm2 }
  0xaf   :  { %v215_v47 = vsub.f32 1.0, %v214_v43  ;;  %287 = vmatpush.msrb.mxu3 %v2186_v37 }
  0xb0   :  { %v201_v48 = vmul.f32 %v1719_v39, %v200_v44  ;;  %v2240_v44 = vld [vmem:[%s2677_s5] ss:$0 sm:$0xff] }
  0xb1   :  { %v216_v51 = vmul.f32 %v1721_v41, %v215_v47  ;;  %288 = vmatpush.msrb.mxu3 %v2192_v38 }
  0xb2   :  { %v202_v53 = vadd.f32 %v1719_v39, %v201_v48 }
  0xb3   :  { %v217_v55 = vadd.f32 %v1721_v41, %v216_v51 }
  0xb4   :  { %v206_v56 = vsel %vm205_vm4, %v1719_v39, %v202_v53  ;;  %v2198_v39 = vld [vmem:[%s2676_s4 + $0x10] sm:$0xff] }
  0xb5   :  { %v211_v59 = vsel %vm208_vm7, %v210_v54, %v206_v56  ;;  %v221_v60 = vsel %vm220_vm8, %v1721_v41, %v217_v55  ;;  %289 = vmatpush.msrb.mxu3 %v2198_v39  ;;  %v2210_v41 = vld [vmem:[%s2676_s4] sm:$0xff]  ;;  %s1895_s4 = smov 5  }
  0xb6   :  { %v226_v61 = vsel %vm223_vm9, %v225_v57, %v221_v60  ;;  %v230_v28 = vmul.f32 0.0, %v211_v59 }
  0xb7   :  { %v229_v62 = vsel %vm90_vm6, %v1723_v58, %v226_v61  ;;  %290 = vmatpush.msrb.mxu3 %v2204_v40 }
  0xb8   :  { %v231_v63 = vmul.f32 %v229_v62, %v211_v59 }
  0xb9   :  { %291 = vmatpush.msrb.mxu3 %v2210_v41 }
  0xba   :  { %233 = vrot.lane.b32.xlu0 %v231_v63, %s1891_s3 }
  0xbb   :  { %354 = vmatpush.msra.mxu3 %v1985_v7 }
 0x12c   :  { %v234_v29 = vpop.permute.xlu0 %233 }
 0x12d   :  { %v2155_v30 = vadd.f32 %v234_v29, %v230_v28 }
 0x12f   :  { %1724 = vtanh.f32 %v2155_v30 }
 0x135   :  { %v1725_v31 = vpop.eup %1724 }
 0x136   :  { %v238_v32 = vmul.f32 %v1725_v31, %v229_v62 }
 0x138   :  { %272 = vrot.lane.b32.xlu0 %v238_v32, %s1891_s3  ;;  %v239_v33 = vmax.f32 %v238_v32, 0.0 }
 0x13a   :  { %244 = vrot.lane.b32.xlu2 %v239_v33, %s1891_s3 }
 0x194   :  { %v245_v42 = vpop.permute.xlu2 %244 }
 0x195   :  { %1644 = vmatmul.msk.f32.vlgmr.msrb.gmra.mxu2 %vm93_vm10, %v245_v42 }
 0x196   :  { %541 = vmatpush.msrb.mxu2 %v1985_v7 }
 0x1aa   :  { %v273_v43 = vpop.permute.xlu0 %272 }
 0x1ab   :  { %1645 = vmatmul.msk.f32.vlgmr.msrb.gmra.mxu3 %vm93_vm10, %v273_v43  ;;  %1646 = vmatmul.msk.f32.vlgmr.msrb.gmra.mxu0 %vm93_vm10, %v273_v43 }
 0x1ac   :  { %1647 = vmatmul.msk.f32.vlgmr.msrb.gmra.mxu1 %vm93_vm10, %v273_v43  ;;  %374 = vmatpush.msrb.mxu3 %v1987_v8 }
 0x1ad   :  { %633 = vmatpush.msrb.mxu0 %v2108_v0  ;;  %658 = vmatpush.msrb.mxu1 %v2169_v34 }
 0x1af   :  { %634 = vmatpush.msrb.mxu0 %v2113_v11  ;;  %659 = vmatpush.msrb.mxu1 %v2174_v35 }
 0x1b1   :  { %635 = vmatpush.msrb.mxu0 %v2119_v20  ;;  %660 = vmatpush.msrb.mxu1 %v2180_v36 }
 0x1b3   :  { %636 = vmatpush.msrb.mxu0 %v2125_v21  ;;  %661 = vmatpush.msrb.mxu1 %v2186_v37 }
 0x1b5   :  { %637 = vmatpush.msrb.mxu0 %v2131_v22  ;;  %662 = vmatpush.msrb.mxu1 %v2192_v38 }
 0x1b7   :  { %638 = vmatpush.msrb.mxu0 %v2137_v23  ;;  %663 = vmatpush.msrb.mxu1 %v2198_v39 }
 0x1b9   :  { %639 = vmatpush.msrb.mxu0 %v2143_v26  ;;  %664 = vmatpush.msrb.mxu1 %v2204_v40 }
 0x1bb   :  { %640 = vmatpush.msrb.mxu0 %v2149_v27  ;;  %665 = vmatpush.msrb.mxu1 %v2210_v41 }
 0x228   :  { %v313_v48 = vpop.f32.mrf.mxu0 }
 0x229   :  { %v333_v53 = vpop.f32.mrf.mxu1 }
 0x22e   :  { %v293_v46 = vpop.f32.mrf.mxu3 }
 0x22f   :  { %v294_v47 = vadd.f32 %v2240_v44, %v293_v46 }
 0x231   :  { %1648 = vmatmul.msk.f32.vlgmr.msra.gmra.mxu3 %vm137_vm0, %v294_v47 }
 0x232   :  { %471 = vmatpush.msra.mxu3 %v2169_v34 }
 0x234   :  { %472 = vmatpush.msra.mxu3 %v2174_v35 }
 0x236   :  { %473 = vmatpush.msra.mxu3 %v2180_v36 }
 0x238   :  { %474 = vmatpush.msra.mxu3 %v2186_v37 }
 0x239   :  { %1649 = vmatmul.msk.f32.vlgmr.msrb.gmra.mxu3 %vm137_vm0, %v294_v47 }
 0x23a   :  { %475 = vmatpush.msra.mxu3 %v2192_v38 }
 0x23c   :  { %476 = vmatpush.msra.mxu3 %v2198_v39 }
 0x23e   :  { %477 = vmatpush.msra.mxu3 %v2204_v40 }
 0x240   :  { %478 = vmatpush.msra.mxu3 %v2210_v41 }
 0x242   :  { %561 = vmatpush.msrb.mxu3 %v1987_v8 }
 0x2b4   :  { %v356_v49 = vpop.f32.mrf.mxu3 }
 0x2b5   :  { %v357_v50 = vadd.f32 %v356_v49, %v313_v48 }
 0x2b7   :  { %v379_v51 = vadd.f32 %v357_v50, %v2093_v24 }
 0x2b9   :  { %v1650_v52 = vmul.f32 -1.442695, %v379_v51 }
 0x2bb   :  { %1726 = vpow2.f32 %v1650_v52 }
 0x2bc   :  { %v376_v54 = vpop.f32.mrf.mxu3 }
 0x2bd   :  { %v377_v55 = vadd.f32 %v376_v54, %v333_v53 }
 0x2bf   :  { %v380_v56 = vadd.f32 %v377_v55, %v2095_v25 }
 0x2c1   :  { %v1727_v57 = vpop.eup %1726  ;;  %v1651_v58 = vmul.f32 -1.442695, %v380_v56 }
 0x2c2   :  { %v389_v59 = vadd.f32 1.0, %v1727_v57 }
 0x2c3   :  { %1728 = vpow2.f32 %v1651_v58 }
 0x2c4   :  { %1730 = vrcp.f32 %v389_v59  ;;  %v402_v46 = vand.u32 2147483648, %v389_v59  ;;  %vm396_vm13 = vweird.f32 %v389_v59  ;;  %v400_v49 = vand.u32 2147483647, %v389_v59 }
 0x2c6   :  { %v403_v53 = vor.u32 1.1754944e-38, %v402_v46  ;;  %vm401_vm3 = vcmp.eq.f32.partialorder %v400_v49, 8.507059e+37 }
 0x2c9   :  { %v1729_v60 = vpop.eup %1728 }
 0x2ca   :  { %v1731_v61 = vpop.eup %1730  ;;  %v390_v62 = vadd.f32 1.0, %v1729_v60 }
 0x2cb   :  { %v392_v63 = vmul.f32 %v1731_v61, %v389_v59  ;;  %vm397_vm11 = vweird.f32 %v1731_v61 }
 0x2cc   :  { %1732 = vrcp.f32 %v390_v62  ;;  %v417_v43 = vand.u32 2147483648, %v390_v62  ;;  %v415_v48 = vand.u32 2147483647, %v390_v62  ;;  %vm398_vm14 = vmor %vm396_vm13, %vm397_vm11  ;;  %vm411_vm15 = vweird.f32 %v390_v62 }
 0x2cd   :  { %v393_v28 = vsub.f32 1.0, %v392_v63  ;;  %1734 = vtanh.f32 %v380_v56 }
 0x2ce   :  { %v418_v52 = vor.u32 1.1754944e-38, %v417_v43  ;;  %vm416_vm2 = vcmp.eq.f32.partialorder %v415_v48, 8.507059e+37 }
 0x2cf   :  { %v394_v31 = vmul.f32 %v1731_v61, %v393_v28 }
 0x2d1   :  { %v395_v42 = vadd.f32 %v1731_v61, %v394_v31 }
 0x2d2   :  { %v1733_v29 = vpop.eup %1732 }
 0x2d3   :  { %v407_v32 = vmul.f32 %v1733_v29, %v390_v62  ;;  %vm412_vm12 = vweird.f32 %v1733_v29  ;;  %v399_v51 = vsel %vm398_vm14, %v1731_v61, %v395_v42  ;;  %v1735_v55 = vpop.eup %1734  ;;  %v2306_v42 = vpop.f32.mrf.mxu2 }
 0x2d4   :  { %vm413_vm1 = vmor %vm411_vm15, %vm412_vm12  ;;  %v404_v57 = vsel %vm401_vm3, %v403_v53, %v399_v51 }
 0x2d5   :  { %v408_v33 = vsub.f32 1.0, %v407_v32  ;;  %v423_v59 = vmul.f32 %v404_v57, %v2155_v30 }
 0x2d7   :  { %v409_v47 = vmul.f32 %v1733_v29, %v408_v33 }
 0x2d9   :  { %v410_v50 = vadd.f32 %v1733_v29, %v409_v47 }
 0x2db   :  { %v414_v54 = vsel %vm413_vm1, %v1733_v29, %v410_v50 }
 0x2dc   :  { %v419_v56 = vsel %vm416_vm2, %v418_v52, %v414_v54 }
 0x2dd   :  { %v422_v58 = vsel %vm90_vm6, %v1735_v55, %v419_v56 }
 0x2de   :  { %v424_v60 = vmul.f32 %v422_v58, %v404_v57 }
 0x2e0   :  { %426 = vrot.lane.b32.xlu1 %v424_v60, %s1891_s3 }
 0x352   :  { %v427_v63 = vpop.permute.xlu1 %426 }
 0x353   :  { %v2260_v62 = vadd.f32 %v427_v63, %v423_v59 }
 0x355   :  { %1736 = vtanh.f32 %v2260_v62 }
 0x35b   :  { %v1737_v61 = vpop.eup %1736 }
 0x35c   :  { %v431_v28 = vmul.f32 %v1737_v61, %v422_v58 }
 0x35e   :  { %459 = vrot.lane.b32.xlu1 %v431_v28, %s1891_s3  ;;  %v432_v29 = vmax.f32 %v431_v28, 0.0 }
 0x360   :  { %434 = vrot.lane.b32.xlu2 %v432_v29, %s1891_s3 }
 0x3ba   :  { %v435_v31 = vpop.permute.xlu2 %434 }
 0x3bb   :  { %1652 = vmatmul.msk.f32.vlgmr.msra.gmra.mxu2 %vm93_vm10, %v435_v31 }
 0x3bc   :  { %678 = vmatpush.msra.mxu2 %v1954_v1 }
 0x3be   :  { %679 = vmatpush.msra.mxu2 %v1964_v3 }
 0x3c0   :  { %680 = vmatpush.msra.mxu2 %v1976_v5 }
 0x3c2   :  { %681 = vmatpush.msra.mxu2 %v1992_v9 }
 0x3c4   :  { %682 = vmatpush.msra.mxu2 %v2009_v12 }
 0x3c6   :  { %683 = vmatpush.msra.mxu2 %v2023_v14 }
 0x3c8   :  { %684 = vmatpush.msra.mxu2 %v2035_v16 }
 0x3ca   :  { %685 = vmatpush.msra.mxu2 %v2047_v18 }
 0x3d0   :  { %v460_v30 = vpop.permute.xlu1 %459 }
 0x3d1   :  { %1653 = vmatmul.msk.f32.vlgmr.msra.gmra.mxu3 %vm93_vm10, %v460_v30  ;;  %1654 = vmatmul.msk.f32.vlgmr.msra.gmra.mxu0 %vm93_vm10, %v460_v30 }
 0x3d2   :  { %1655 = vmatmul.msk.f32.vlgmr.msra.gmra.mxu1 %vm93_vm10, %v460_v30  ;;  %698 = vmatpush.msra.mxu3 %v1959_v2 }
 0x3d3   :  { %748 = vmatpush.msra.mxu1 %v1987_v8  ;;  %728 = vmatpush.msra.mxu0 %v1985_v7 }
 0x3d4   :  { %699 = vmatpush.msra.mxu3 %v1971_v4 }
 0x3d6   :  { %700 = vmatpush.msra.mxu3 %v1981_v6 }
 0x3d8   :  { %701 = vmatpush.msra.mxu3 %v1997_v10 }
 0x3da   :  { %702 = vmatpush.msra.mxu3 %v2014_v13 }
 0x3dc   :  { %703 = vmatpush.msra.mxu3 %v2028_v15 }
 0x3de   :  { %704 = vmatpush.msra.mxu3 %v2040_v17 }
 0x3e0   :  { %705 = vmatpush.msra.mxu3 %v2052_v19 }
 0x43e   :  { %v2308_v43 = vpop.f32.mrf.mxu2 }
 0x44e   :  { %v500_v46 = vpop.f32.mrf.mxu0 }
 0x44f   :  { %v520_v47 = vpop.f32.mrf.mxu1 }
 0x454   :  { %v480_v32 = vpop.f32.mrf.mxu3 }
 0x455   :  { %v481_v33 = vadd.f32 %v2240_v44, %v480_v32 }
 0x457   :  { %1656 = vmatmul.msk.f32.vlgmr.msrb.gmra.mxu2 %vm137_vm0, %v481_v33  ;;  %1657 = vmatmul.msk.f32.vlgmr.msrb.gmra.mxu3 %vm137_vm0, %v481_v33 }
 0x458   :  { %820 = vmatpush.msrb.mxu2 %v2108_v0  ;;  %845 = vmatpush.msrb.mxu3 %v2169_v34 }
 0x45a   :  { %821 = vmatpush.msrb.mxu2 %v2113_v11  ;;  %846 = vmatpush.msrb.mxu3 %v2174_v35 }
 0x45c   :  { %822 = vmatpush.msrb.mxu2 %v2119_v20  ;;  %847 = vmatpush.msrb.mxu3 %v2180_v36 }
 0x45e   :  { %823 = vmatpush.msrb.mxu2 %v2125_v21  ;;  %848 = vmatpush.msrb.mxu3 %v2186_v37 }
 0x460   :  { %824 = vmatpush.msrb.mxu2 %v2131_v22  ;;  %849 = vmatpush.msrb.mxu3 %v2192_v38 }
 0x462   :  { %825 = vmatpush.msrb.mxu2 %v2137_v23  ;;  %850 = vmatpush.msrb.mxu3 %v2198_v39 }
 0x464   :  { %826 = vmatpush.msrb.mxu2 %v2143_v26  ;;  %851 = vmatpush.msrb.mxu3 %v2204_v40 }
 0x466   :  { %827 = vmatpush.msrb.mxu2 %v2149_v27  ;;  %852 = vmatpush.msrb.mxu3 %v2210_v41 }
 0x4da   :  { %v543_v48 = vpop.f32.mrf.mxu2  ;;  %v563_v49 = vpop.f32.mrf.mxu3 }
 0x4db   :  { %v544_v50 = vadd.f32 %v543_v48, %v500_v46  ;;  %v564_v51 = vadd.f32 %v563_v49, %v520_v47 }
 0x4dd   :  { %v566_v52 = vadd.f32 %v544_v50, %v2093_v24  ;;  %v567_v53 = vadd.f32 %v564_v51, %v2095_v25 }
 0x4df   :  { %v1658_v54 = vmul.f32 -1.442695, %v566_v52  ;;  %v1659_v55 = vmul.f32 -1.442695, %v567_v53 }
 0x4e1   :  { %1738 = vpow2.f32 %v1658_v54 }
 0x4e2   :  { %1740 = vpow2.f32 %v1659_v55 }
 0x4e7   :  { %v1739_v56 = vpop.eup %1738 }
 0x4e8   :  { %v1741_v57 = vpop.eup %1740  ;;  %v576_v58 = vadd.f32 1.0, %v1739_v56 }
 0x4e9   :  { %v577_v60 = vadd.f32 1.0, %v1741_v57 }
 0x4ea   :  { %1742 = vrcp.f32 %v576_v58  ;;  %v589_v31 = vand.u32 2147483648, %v576_v58  ;;  %v587_v33 = vand.u32 2147483647, %v576_v58  ;;  %vm583_vm7 = vweird.f32 %v576_v58 }
 0x4eb   :  { %1744 = vrcp.f32 %v577_v60  ;;  %v604_v46 = vand.u32 2147483648, %v577_v60  ;;  %v602_v48 = vand.u32 2147483647, %v577_v60  ;;  %vm598_vm9 = vweird.f32 %v577_v60 }
 0x4ec   :  { %1746 = vtanh.f32 %v567_v53  ;;  %v590_v50 = vor.u32 1.1754944e-38, %v589_v31  ;;  %vm588_vm11 = vcmp.eq.f32.partialorder %v587_v33, 8.507059e+37 }
 0x4ed   :  { %v605_v54 = vor.u32 1.1754944e-38, %v604_v46  ;;  %vm603_vm13 = vcmp.eq.f32.partialorder %v602_v48, 8.507059e+37 }
 0x4f0   :  { %v1743_v59 = vpop.eup %1742 }
 0x4f1   :  { %v1745_v63 = vpop.eup %1744  ;;  %v579_v61 = vmul.f32 %v1743_v59, %v576_v58  ;;  %vm584_vm4 = vweird.f32 %v1743_v59 }
 0x4f2   :  { %v594_v28 = vmul.f32 %v1745_v63, %v577_v60  ;;  %vm599_vm5 = vweird.f32 %v1745_v63  ;;  %vm585_vm8 = vmor %vm583_vm7, %vm584_vm4  ;;  %v1747_v53 = vpop.eup %1746 }
 0x4f3   :  { %v580_v29 = vsub.f32 1.0, %v579_v61  ;;  %vm600_vm12 = vmor %vm598_vm9, %vm599_vm5 }
 0x4f4   :  { %v595_v30 = vsub.f32 1.0, %v594_v28 }
 0x4f5   :  { %v581_v32 = vmul.f32 %v1743_v59, %v580_v29 }
 0x4f6   :  { %v596_v47 = vmul.f32 %v1745_v63, %v595_v30 }
 0x4f7   :  { %v582_v49 = vadd.f32 %v1743_v59, %v581_v32 }
 0x4f8   :  { %v597_v51 = vadd.f32 %v1745_v63, %v596_v47 }
 0x4f9   :  { %v586_v52 = vsel %vm585_vm8, %v1743_v59, %v582_v49 }
 0x4fa   :  { %v591_v55 = vsel %vm588_vm11, %v590_v50, %v586_v52  ;;  %v601_v56 = vsel %vm600_vm12, %v1745_v63, %v597_v51 }
 0x4fb   :  { %v606_v57 = vsel %vm603_vm13, %v605_v54, %v601_v56  ;;  %v610_v58 = vmul.f32 %v591_v55, %v2260_v62 }
 0x4fc   :  { %v609_v61 = vsel %vm90_vm6, %v1747_v53, %v606_v57 }
 0x4fd   :  { %v611_v28 = vmul.f32 %v609_v61, %v591_v55 }
 0x4ff   :  { %613 = vrot.lane.b32.xlu0 %v611_v28, %s1891_s3 }
 0x571   :  { %v614_v29 = vpop.permute.xlu0 %613 }
 0x572   :  { %v2316_v31 = vadd.f32 %v614_v29, %v610_v58 }
 0x574   :  { %1748 = vtanh.f32 %v2316_v31 }
 0x57a   :  { %v1749_v60 = vpop.eup %1748 }
 0x57b   :  { %v618_v59 = vmul.f32 %v1749_v60, %v609_v61 }
 0x57d   :  { %646 = vrot.lane.b32.xlu1 %v618_v59, %s1891_s3  ;;  %v619_v63 = vmax.f32 %v618_v59, 0.0 }
 0x57f   :  { %621 = vrot.lane.b32.xlu2 %v619_v63, %s1891_s3 }
 0x5d9   :  { %v622_v30 = vpop.permute.xlu2 %621 }
 0x5da   :  { %1660 = vmatmul.msk.f32.vlgmr.msrb.gmra.mxu0 %vm93_vm10, %v622_v30 }
 0x5db   :  { %865 = vmatpush.msrb.mxu0 %v1954_v1 }
 0x5dd   :  { %866 = vmatpush.msrb.mxu0 %v1964_v3 }
 0x5df   :  { %867 = vmatpush.msrb.mxu0 %v1976_v5 }
 0x5e1   :  { %868 = vmatpush.msrb.mxu0 %v1992_v9 }
 0x5e3   :  { %869 = vmatpush.msrb.mxu0 %v2009_v12 }
 0x5e5   :  { %870 = vmatpush.msrb.mxu0 %v2023_v14 }
 0x5e7   :  { %871 = vmatpush.msrb.mxu0 %v2035_v16 }
 0x5e9   :  { %872 = vmatpush.msrb.mxu0 %v2047_v18 }
 0x5ef   :  { %v647_v62 = vpop.permute.xlu1 %646 }
 0x5f0   :  { %1661 = vmatmul.msk.f32.vlgmr.msrb.gmra.mxu1 %vm93_vm10, %v647_v62  ;;  %1662 = vmatmul.msk.f32.vlgmr.msra.gmra.mxu2 %vm93_vm10, %v647_v62 }
 0x5f1   :  { %1663 = vmatmul.msk.f32.vlgmr.msra.gmra.mxu3 %vm93_vm10, %v647_v62  ;;  %885 = vmatpush.msrb.mxu1 %v1959_v2 }
 0x5f2   :  { %935 = vmatpush.msra.mxu3 %v1987_v8  ;;  %915 = vmatpush.msra.mxu2 %v1985_v7 }
 0x5f3   :  { %886 = vmatpush.msrb.mxu1 %v1971_v4 }
 0x5f5   :  { %887 = vmatpush.msrb.mxu1 %v1981_v6 }
 0x5f7   :  { %888 = vmatpush.msrb.mxu1 %v1997_v10 }
 0x5f9   :  { %889 = vmatpush.msrb.mxu1 %v2014_v13 }
 0x5fb   :  { %890 = vmatpush.msrb.mxu1 %v2028_v15 }
 0x5fd   :  { %891 = vmatpush.msrb.mxu1 %v2040_v17 }
 0x5ff   :  { %892 = vmatpush.msrb.mxu1 %v2052_v19 }
 0x657   :  { %v2362_v46 = vpop.f32.mrf.mxu0 }
 0x66d   :  { %v667_v32 = vpop.f32.mrf.mxu1 }
 0x66e   :  { %v668_v33 = vadd.f32 %v2240_v44, %v667_v32 }
 0x670   :  { %1664 = vmatmul.msk.f32.vlgmr.msra.gmra.mxu0 %vm137_vm0, %v668_v33  ;;  %1665 = vmatmul.msk.f32.vlgmr.msra.gmra.mxu1 %vm137_vm0, %v668_v33 }
 0x671   :  { %1007 = vmatpush.msra.mxu0 %v2108_v0  ;;  %1032 = vmatpush.msra.mxu1 %v2169_v34 }
 0x673   :  { %1008 = vmatpush.msra.mxu0 %v2113_v11  ;;  %1033 = vmatpush.msra.mxu1 %v2174_v35  ;;  %v687_v47 = vpop.f32.mrf.mxu2 }
 0x674   :  { %v707_v48 = vpop.f32.mrf.mxu3 }
 0x675   :  { %1009 = vmatpush.msra.mxu0 %v2119_v20  ;;  %1034 = vmatpush.msra.mxu1 %v2180_v36 }
 0x677   :  { %1010 = vmatpush.msra.mxu0 %v2125_v21  ;;  %1035 = vmatpush.msra.mxu1 %v2186_v37 }
 0x679   :  { %1011 = vmatpush.msra.mxu0 %v2131_v22  ;;  %1036 = vmatpush.msra.mxu1 %v2192_v38 }
 0x67b   :  { %1012 = vmatpush.msra.mxu0 %v2137_v23  ;;  %1037 = vmatpush.msra.mxu1 %v2198_v39 }
 0x67d   :  { %1013 = vmatpush.msra.mxu0 %v2143_v26  ;;  %1038 = vmatpush.msra.mxu1 %v2204_v40 }
 0x67f   :  { %1014 = vmatpush.msra.mxu0 %v2149_v27  ;;  %1039 = vmatpush.msra.mxu1 %v2210_v41 }
 0x6ed   :  { %v730_v49 = vpop.f32.mrf.mxu0  ;;  %v750_v50 = vpop.f32.mrf.mxu1 }
 0x6ee   :  { %v731_v51 = vadd.f32 %v730_v49, %v687_v47  ;;  %v751_v52 = vadd.f32 %v750_v50, %v707_v48 }
 0x6f0   :  { %v753_v54 = vadd.f32 %v731_v51, %v2093_v24  ;;  %v754_v53 = vadd.f32 %v751_v52, %v2095_v25 }
 0x6f2   :  { %v1666_v55 = vmul.f32 -1.442695, %v753_v54  ;;  %v1667_v56 = vmul.f32 -1.442695, %v754_v53 }
 0x6f4   :  { %1750 = vpow2.f32 %v1666_v55 }
 0x6f5   :  { %1752 = vpow2.f32 %v1667_v56 }
 0x6fa   :  { %v1751_v57 = vpop.eup %1750 }
 0x6fb   :  { %v1753_v61 = vpop.eup %1752  ;;  %v763_v28 = vadd.f32 1.0, %v1751_v57 }
 0x6fc   :  { %v764_v58 = vadd.f32 1.0, %v1753_v61 }
 0x6fd   :  { %1754 = vrcp.f32 %v763_v28  ;;  %v776_v62 = vand.u32 2147483648, %v763_v28  ;;  %v774_v47 = vand.u32 2147483647, %v763_v28  ;;  %vm770_vm1 = vweird.f32 %v763_v28 }
 0x6fe   :  { %1756 = vrcp.f32 %v764_v58  ;;  %v791_v48 = vand.u32 2147483648, %v764_v58  ;;  %v789_v50 = vand.u32 2147483647, %v764_v58  ;;  %vm785_vm3 = vweird.f32 %v764_v58 }
 0x6ff   :  { %1758 = vtanh.f32 %v754_v53  ;;  %v777_v52 = vor.u32 1.1754944e-38, %v776_v62  ;;  %vm775_vm4 = vcmp.eq.f32.partialorder %v774_v47, 8.507059e+37 }
 0x700   :  { %v792_v56 = vor.u32 1.1754944e-38, %v791_v48  ;;  %vm790_vm7 = vcmp.eq.f32.partialorder %v789_v50, 8.507059e+37 }
 0x703   :  { %v1755_v29 = vpop.eup %1754 }
 0x704   :  { %v1757_v60 = vpop.eup %1756  ;;  %v766_v59 = vmul.f32 %v1755_v29, %v763_v28  ;;  %vm771_vm14 = vweird.f32 %v1755_v29 }
 0x705   :  { %v781_v63 = vmul.f32 %v1757_v60, %v764_v58  ;;  %vm786_vm15 = vweird.f32 %v1757_v60  ;;  %vm772_vm2 = vmor %vm770_vm1, %vm771_vm14  ;;  %v1759_v53 = vpop.eup %1758 }
 0x706   :  { %v767_v30 = vsub.f32 1.0, %v766_v59  ;;  %vm787_vm5 = vmor %vm785_vm3, %vm786_vm15 }
 0x707   :  { %v782_v32 = vsub.f32 1.0, %v781_v63 }
 0x708   :  { %v768_v33 = vmul.f32 %v1755_v29, %v767_v30 }
 0x709   :  { %v783_v49 = vmul.f32 %v1757_v60, %v782_v32 }
 0x70a   :  { %v769_v51 = vadd.f32 %v1755_v29, %v768_v33 }
 0x70b   :  { %v784_v54 = vadd.f32 %v1757_v60, %v783_v49 }
 0x70c   :  { %v773_v55 = vsel %vm772_vm2, %v1755_v29, %v769_v51 }
 0x70d   :  { %v778_v57 = vsel %vm775_vm4, %v777_v52, %v773_v55  ;;  %v788_v61 = vsel %vm787_vm5, %v1757_v60, %v784_v54 }
 0x70e   :  { %v793_v59 = vsel %vm790_vm7, %v792_v56, %v788_v61  ;;  %v797_v28 = vmul.f32 %v778_v57, %v2316_v31 }
 0x70f   :  { %v796_v63 = vsel %vm90_vm6, %v1759_v53, %v793_v59 }
 0x710   :  { %v798_v30 = vmul.f32 %v796_v63, %v778_v57 }
 0x712   :  { %800 = vrot.lane.b32.xlu0 %v798_v30, %s1891_s3 }
 0x784   :  { %v801_v62 = vpop.permute.xlu0 %800 }
 0x785   :  { %v2370_v32 = vadd.f32 %v801_v62, %v797_v28 }
 0x787   :  { %1760 = vtanh.f32 %v2370_v32 }
 0x78d   :  { %v1761_v58 = vpop.eup %1760 }
 0x78e   :  { %v805_v29 = vmul.f32 %v1761_v58, %v796_v63 }
 0x790   :  { %833 = vrot.lane.b32.xlu1 %v805_v29, %s1891_s3  ;;  %v806_v60 = vmax.f32 %v805_v29, 0.0 }
 0x792   :  { %808 = vrot.lane.b32.xlu2 %v806_v60, %s1891_s3 }
 0x7ec   :  { %v809_v33 = vpop.permute.xlu2 %808 }
 0x7ed   :  { %1668 = vmatmul.msk.f32.vlgmr.msrb.gmra.mxu2 %vm93_vm10, %v809_v33 }
 0x7ee   :  { %1052 = vmatpush.msrb.mxu2 %v1954_v1 }
 0x7f0   :  { %1053 = vmatpush.msrb.mxu2 %v1964_v3 }
 0x7f2   :  { %1054 = vmatpush.msrb.mxu2 %v1976_v5 }
 0x7f4   :  { %1055 = vmatpush.msrb.mxu2 %v1992_v9 }
 0x7f6   :  { %1056 = vmatpush.msrb.mxu2 %v2009_v12 }
 0x7f8   :  { %1057 = vmatpush.msrb.mxu2 %v2023_v14 }
 0x7fa   :  { %1058 = vmatpush.msrb.mxu2 %v2035_v16 }
 0x7fc   :  { %1059 = vmatpush.msrb.mxu2 %v2047_v18 }
 0x802   :  { %v834_v31 = vpop.permute.xlu1 %833 }
 0x803   :  { %1669 = vmatmul.msk.f32.vlgmr.msrb.gmra.mxu3 %vm93_vm10, %v834_v31  ;;  %1670 = vmatmul.msk.f32.vlgmr.msrb.gmra.mxu0 %vm93_vm10, %v834_v31 }
 0x804   :  { %1671 = vmatmul.msk.f32.vlgmr.msrb.gmra.mxu1 %vm93_vm10, %v834_v31  ;;  %1072 = vmatpush.msrb.mxu3 %v1959_v2 }
 0x805   :  { %1122 = vmatpush.msrb.mxu1 %v1987_v8  ;;  %1102 = vmatpush.msrb.mxu0 %v1985_v7 }
 0x806   :  { %1073 = vmatpush.msrb.mxu3 %v1971_v4 }
 0x808   :  { %1074 = vmatpush.msrb.mxu3 %v1981_v6 }
 0x80a   :  { %1075 = vmatpush.msrb.mxu3 %v1997_v10 }
 0x80c   :  { %1076 = vmatpush.msrb.mxu3 %v2014_v13 }
 0x80e   :  { %1077 = vmatpush.msrb.mxu3 %v2028_v15 }
 0x810   :  { %1078 = vmatpush.msrb.mxu3 %v2040_v17 }
 0x812   :  { %1079 = vmatpush.msrb.mxu3 %v2052_v19 }
 0x870   :  { %v2416_v3 = vpop.f32.mrf.mxu2 }
 0x880   :  { %v874_v4 = vpop.f32.mrf.mxu0 }
 0x881   :  { %v894_v5 = vpop.f32.mrf.mxu1 }
 0x886   :  { %v854_v1 = vpop.f32.mrf.mxu3 }
 0x887   :  { %v855_v2 = vadd.f32 %v2240_v44, %v854_v1 }
 0x889   :  { %1672 = vmatmul.msk.f32.vlgmr.msra.gmra.mxu2 %vm137_vm0, %v855_v2  ;;  %1673 = vmatmul.msk.f32.vlgmr.msra.gmra.mxu3 %vm137_vm0, %v855_v2 }
 0x88a   :  { %1194 = vmatpush.msra.mxu2 %v2108_v0  ;;  %1219 = vmatpush.msra.mxu3 %v2169_v34 }
 0x88c   :  { %1195 = vmatpush.msra.mxu2 %v2113_v11  ;;  %1220 = vmatpush.msra.mxu3 %v2174_v35 }
 0x88e   :  { %1196 = vmatpush.msra.mxu2 %v2119_v20  ;;  %1221 = vmatpush.msra.mxu3 %v2180_v36 }
 0x890   :  { %1197 = vmatpush.msra.mxu2 %v2125_v21  ;;  %1222 = vmatpush.msra.mxu3 %v2186_v37 }
 0x892   :  { %1198 = vmatpush.msra.mxu2 %v2131_v22  ;;  %1223 = vmatpush.msra.mxu3 %v2192_v38 }
 0x894   :  { %1199 = vmatpush.msra.mxu2 %v2137_v23  ;;  %1224 = vmatpush.msra.mxu3 %v2198_v39 }
 0x896   :  { %1200 = vmatpush.msra.mxu2 %v2143_v26  ;;  %1225 = vmatpush.msra.mxu3 %v2204_v40 }
 0x898   :  { %1201 = vmatpush.msra.mxu2 %v2149_v27  ;;  %1226 = vmatpush.msra.mxu3 %v2210_v41 }
 0x90c   :  { %v917_v6 = vpop.f32.mrf.mxu2  ;;  %v937_v7 = vpop.f32.mrf.mxu3 }
 0x90d   :  { %v918_v8 = vadd.f32 %v917_v6, %v874_v4  ;;  %v938_v9 = vadd.f32 %v937_v7, %v894_v5 }
 0x90f   :  { %v940_v10 = vadd.f32 %v918_v8, %v2093_v24  ;;  %v941_v12 = vadd.f32 %v938_v9, %v2095_v25  ;;  %v2433_v9 = vld [vmem:[%s2674_s2 + $0x70] sm:$0xff] }
 0x911   :  { %v1674_v13 = vmul.f32 -1.442695, %v940_v10  ;;  %v1675_v14 = vmul.f32 -1.442695, %v941_v12  ;;  %v2445_v10 = vld [vmem:[%s2674_s2 + $0x50] sm:$0xff] }
 0x913   :  { %1762 = vpow2.f32 %v1674_v13  ;;  %v2457_v13 = vld [vmem:[%s2674_s2 + $0x30] sm:$0xff] }
 0x914   :  { %1764 = vpow2.f32 %v1675_v14  ;;  %v2463_v14 = vld [vmem:[%s2674_s2 + $0x20] sm:$0xff] }
 0x919   :  { %v1763_v15 = vpop.eup %1762 }
 0x91a   :  { %v1765_v16 = vpop.eup %1764  ;;  %v950_v17 = vadd.f32 1.0, %v1763_v15  ;;  %v2469_v15 = vld [vmem:[%s2674_s2 + $0x10] sm:$0xff] }
 0x91b   :  { %v951_v18 = vadd.f32 1.0, %v1765_v16  ;;  %v2475_v16 = vld [vmem:[%s2674_s2] sm:$0xff] }
 0x91c   :  { %1766 = vrcp.f32 %v950_v17  ;;  %v963_v51 = vand.u32 2147483648, %v950_v17  ;;  %v961_v55 = vand.u32 2147483647, %v950_v17  ;;  %vm957_vm11 = vweird.f32 %v950_v17 }
 0x91d   :  { %1768 = vrcp.f32 %v951_v18  ;;  %v978_v56 = vand.u32 2147483648, %v951_v18  ;;  %v976_v57 = vand.u32 2147483647, %v951_v18  ;;  %vm972_vm13 = vweird.f32 %v951_v18 }
 0x91e   :  { %1770 = vtanh.f32 %v941_v12  ;;  %v964_v59 = vor.u32 1.1754944e-38, %v963_v51  ;;  %vm962_vm14 = vcmp.eq.f32.partialorder %v961_v55, 8.507059e+37  ;;  %v2451_v12 = vld [vmem:[%s2674_s2 + $0x40] sm:$0xff]  ;;  %v2514_v51 = vld [vmem:[%s2674_s2 + $0x38] sm:$0xff]  ;;  %v2532_v55 = vld [vmem:[%s2674_s2 + $0x8] sm:$0xff] }
 0x91f   :  { %v979_v28 = vor.u32 1.1754944e-38, %v978_v56  ;;  %vm977_vm1 = vcmp.eq.f32.partialorder %v976_v57, 8.507059e+37 }
 0x922   :  { %v1767_v19 = vpop.eup %1766 }
 0x923   :  { %v1769_v47 = vpop.eup %1768  ;;  %v953_v48 = vmul.f32 %v1767_v19, %v950_v17  ;;  %vm958_vm8 = vweird.f32 %v1767_v19 }
 0x924   :  { %v968_v49 = vmul.f32 %v1769_v47, %v951_v18  ;;  %vm973_vm9 = vweird.f32 %v1769_v47  ;;  %vm959_vm12 = vmor %vm957_vm11, %vm958_vm8  ;;  %v1771_v62 = vpop.eup %1770  ;;  %v2484_v18 = vld [vmem:[%s2674_s2 + $0x78] sm:$0xff] }
 0x925   :  { %v954_v50 = vsub.f32 1.0, %v953_v48  ;;  %vm974_vm15 = vmor %vm972_vm13, %vm973_vm9  ;;  %v2496_v48 = vld [vmem:[%s2674_s2 + $0x68] sm:$0xff] }
 0x926   :  { %v969_v52 = vsub.f32 1.0, %v968_v49  ;;  %v2502_v49 = vld [vmem:[%s2674_s2 + $0x58] sm:$0xff] }
 0x927   :  { %v955_v54 = vmul.f32 %v1767_v19, %v954_v50  ;;  %v2508_v50 = vld [vmem:[%s2674_s2 + $0x48] sm:$0xff] }
 0x928   :  { %v970_v53 = vmul.f32 %v1769_v47, %v969_v52  ;;  %v2520_v52 = vld [vmem:[%s2674_s2 + $0x28] sm:$0xff] }
 0x929   :  { %v956_v61 = vadd.f32 %v1767_v19, %v955_v54  ;;  %v2526_v54 = vld [vmem:[%s2674_s2 + $0x18] sm:$0xff] }
 0x92a   :  { %v971_v63 = vadd.f32 %v1769_v47, %v970_v53 }
 0x92b   :  { %v960_v30 = vsel %vm959_vm12, %v1767_v19, %v956_v61  ;;  %v2487_v19 = vld [vmem:[#allocation3 + $0x8] sm:$0xff] }
 0x92c   :  { %v965_v58 = vsel %vm962_vm14, %v964_v59, %v960_v30  ;;  %v975_v29 = vsel %vm974_vm15, %v1769_v47, %v971_v63  ;;  %v2490_v47 = vld [vmem:[#allocation3] sm:$0xff] }
 0x92d   :  { %v980_v60 = vsel %vm977_vm1, %v979_v28, %v975_v29  ;;  %v984_v1 = vmul.f32 %v965_v58, %v2370_v32  ;;  %v2439_v32 = vld [vmem:[%s2674_s2 + $0x60] sm:$0xff] }
 0x92e   :  { %v983_v33 = vsel %vm90_vm6, %v1771_v62, %v980_v60 }
 0x92f   :  { %v985_v31 = vmul.f32 %v983_v33, %v965_v58 }
 0x931   :  { %987 = vrot.lane.b32.xlu0 %v985_v31, %s1891_s3 }
 0x9a3   :  { %v988_v2 = vpop.permute.xlu0 %987 }
 0x9a4   :  { %v2424_v4 = vadd.f32 %v988_v2, %v984_v1 }
 0x9a6   :  { %1772 = vtanh.f32 %v2424_v4 }
 0x9ac   :  { %v1773_v5 = vpop.eup %1772 }
 0x9ad   :  { %v992_v6 = vmul.f32 %v1773_v5, %v983_v33 }
 0x9af   :  { %1020 = vrot.lane.b32.xlu1 %v992_v6, %s1891_s3  ;;  %v993_v7 = vmax.f32 %v992_v6, 0.0 }
 0x9b1   :  { %995 = vrot.lane.b32.xlu2 %v993_v7, %s1891_s3 }
 0xa0b   :  { %v996_v8 = vpop.permute.xlu2 %995 }
 0xa0c   :  { %1676 = vmatmul.msk.f32.vlgmr.msra.gmra.mxu0 %vm93_vm10, %v996_v8 }
 0xa0d   :  { %1239 = vmatpush.msra.mxu0 %v2433_v9 }
 0xa0f   :  { %1240 = vmatpush.msra.mxu0 %v2439_v32 }
 0xa11   :  { %1241 = vmatpush.msra.mxu0 %v2445_v10 }
 0xa13   :  { %1242 = vmatpush.msra.mxu0 %v2451_v12 }
 0xa15   :  { %1243 = vmatpush.msra.mxu0 %v2457_v13 }
 0xa17   :  { %1244 = vmatpush.msra.mxu0 %v2463_v14 }
 0xa19   :  { %1245 = vmatpush.msra.mxu0 %v2469_v15 }
 0xa1b   :  { %1246 = vmatpush.msra.mxu0 %v2475_v16 }
 0xa21   :  { %v1021_v17 = vpop.permute.xlu1 %1020 }
 0xa22   :  { %1677 = vmatmul.msk.f32.vlgmr.msra.gmra.mxu1 %vm93_vm10, %v1021_v17  ;;  %1678 = vmatmul.msk.f32.vlgmr.msrb.gmra.mxu2 %vm93_vm10, %v1021_v17 }
 0xa23   :  { %1679 = vmatmul.msk.f32.vlgmr.msrb.gmra.mxu3 %vm93_vm10, %v1021_v17  ;;  %1259 = vmatpush.msra.mxu1 %v2484_v18 }
 0xa24   :  { %1309 = vmatpush.msrb.mxu3 %v2487_v19  ;;  %1289 = vmatpush.msrb.mxu2 %v2490_v47 }
 0xa25   :  { %1260 = vmatpush.msra.mxu1 %v2496_v48 }
 0xa27   :  { %1261 = vmatpush.msra.mxu1 %v2502_v49 }
 0xa29   :  { %1262 = vmatpush.msra.mxu1 %v2508_v50 }
 0xa2b   :  { %1263 = vmatpush.msra.mxu1 %v2514_v51 }
 0xa2d   :  { %1264 = vmatpush.msra.mxu1 %v2520_v52 }
 0xa2f   :  { %1265 = vmatpush.msra.mxu1 %v2526_v54 }
 0xa31   :  { %1266 = vmatpush.msra.mxu1 %v2532_v55 }
 0xa9f   :  { %v1041_v56 = vpop.f32.mrf.mxu1 }
 0xaa0   :  { %v1042_v53 = vadd.f32 %v2240_v44, %v1041_v56 }
 0xaa2   :  { %1680 = vmatmul.msk.f32.vlgmr.msrb.gmra.mxu0 %vm137_vm0, %v1042_v53  ;;  %1681 = vmatmul.msk.f32.vlgmr.msrb.gmra.mxu1 %vm137_vm0, %v1042_v53 }
 0xaa3   :  { %1381 = vmatpush.msrb.mxu0 %v2108_v0  ;;  %1406 = vmatpush.msrb.mxu1 %v2169_v34  ;;  %v2554_v0 = vpop.f32.mrf.mxu0 }
 0xaa5   :  { %1382 = vmatpush.msrb.mxu0 %v2113_v11  ;;  %1407 = vmatpush.msrb.mxu1 %v2174_v35  ;;  %v1061_v11 = vpop.f32.mrf.mxu2 }
 0xaa7   :  { %1383 = vmatpush.msrb.mxu0 %v2119_v20  ;;  %1408 = vmatpush.msrb.mxu1 %v2180_v36  ;;  %v1081_v20 = vpop.f32.mrf.mxu3 }
 0xaa9   :  { %1384 = vmatpush.msrb.mxu0 %v2125_v21  ;;  %1409 = vmatpush.msrb.mxu1 %v2186_v37 }
 0xaab   :  { %1385 = vmatpush.msrb.mxu0 %v2131_v22  ;;  %1410 = vmatpush.msrb.mxu1 %v2192_v38 }
 0xaad   :  { %1386 = vmatpush.msrb.mxu0 %v2137_v23  ;;  %1411 = vmatpush.msrb.mxu1 %v2198_v39 }
 0xaaf   :  { %1387 = vmatpush.msrb.mxu0 %v2143_v26  ;;  %1412 = vmatpush.msrb.mxu1 %v2204_v40 }
 0xab1   :  { %1388 = vmatpush.msrb.mxu0 %v2149_v27  ;;  %1413 = vmatpush.msrb.mxu1 %v2210_v41 }
 0xb1f   :  { %v1104_v21 = vpop.f32.mrf.mxu0  ;;  %v1124_v22 = vpop.f32.mrf.mxu1 }
 0xb20   :  { %v1105_v34 = vadd.f32 %v1104_v21, %v1061_v11  ;;  %v1125_v35 = vadd.f32 %v1124_v22, %v1081_v20 }
 0xb22   :  { %v1127_v23 = vadd.f32 %v1105_v34, %v2093_v24  ;;  %v1128_v36 = vadd.f32 %v1125_v35, %v2095_v25 }
 0xb24   :  { %v1682_v37 = vmul.f32 -1.442695, %v1127_v23  ;;  %v1683_v26 = vmul.f32 -1.442695, %v1128_v36 }
 0xb26   :  { %1774 = vpow2.f32 %v1682_v37 }
 0xb27   :  { %1776 = vpow2.f32 %v1683_v26 }
 0xb2c   :  { %v1775_v38 = vpop.eup %1774 }
 0xb2d   :  { %v1777_v27 = vpop.eup %1776  ;;  %v1137_v39 = vadd.f32 1.0, %v1775_v38 }
 0xb2e   :  { %v1138_v40 = vadd.f32 1.0, %v1777_v27 }
 0xb2f   :  { %1778 = vrcp.f32 %v1137_v39  ;;  %v1150_v63 = vand.u32 2147483648, %v1137_v39  ;;  %v1148_v62 = vand.u32 2147483647, %v1137_v39  ;;  %vm1144_vm4 = vweird.f32 %v1137_v39 }
 0xb30   :  { %1780 = vrcp.f32 %v1138_v40  ;;  %v1165_v58 = vand.u32 2147483648, %v1138_v40  ;;  %v1163_v60 = vand.u32 2147483647, %v1138_v40  ;;  %vm1159_vm7 = vweird.f32 %v1138_v40 }
 0xb31   :  { %1782 = vtanh.f32 %v1128_v36  ;;  %v1151_v31 = vor.u32 1.1754944e-38, %v1150_v63  ;;  %vm1149_vm8 = vcmp.eq.f32.partialorder %v1148_v62, 8.507059e+37 }
 0xb32   :  { %v1166_v5 = vor.u32 1.1754944e-38, %v1165_v58  ;;  %vm1164_vm11 = vcmp.eq.f32.partialorder %v1163_v60, 8.507059e+37 }
 0xb35   :  { %v1779_v41 = vpop.eup %1778 }
 0xb36   :  { %v1781_v44 = vpop.eup %1780  ;;  %v1140_v57 = vmul.f32 %v1779_v41, %v1137_v39  ;;  %vm1145_vm2 = vweird.f32 %v1779_v41 }
 0xb37   :  { %v1155_v61 = vmul.f32 %v1781_v44, %v1138_v40  ;;  %vm1160_vm3 = vweird.f32 %v1781_v44  ;;  %vm1146_vm5 = vmor %vm1144_vm4, %vm1145_vm2  ;;  %v1783_v6 = vpop.eup %1782 }
 0xb38   :  { %v1141_v59 = vsub.f32 1.0, %v1140_v57  ;;  %vm1161_vm9 = vmor %vm1159_vm7, %vm1160_vm3 }
 0xb39   :  { %v1156_v30 = vsub.f32 1.0, %v1155_v61 }
 0xb3a   :  { %v1142_v28 = vmul.f32 %v1779_v41, %v1141_v59 }
 0xb3b   :  { %v1157_v29 = vmul.f32 %v1781_v44, %v1156_v30 }
 0xb3c   :  { %v1143_v33 = vadd.f32 %v1779_v41, %v1142_v28 }
 0xb3d   :  { %v1158_v1 = vadd.f32 %v1781_v44, %v1157_v29 }
 0xb3e   :  { %v1147_v2 = vsel %vm1146_vm5, %v1779_v41, %v1143_v33 }
 0xb3f   :  { %v1152_v7 = vsel %vm1149_vm8, %v1151_v31, %v1147_v2  ;;  %v1162_v8 = vsel %vm1161_vm9, %v1781_v44, %v1158_v1 }
 0xb40   :  { %v1167_v17 = vsel %vm1164_vm11, %v1166_v5, %v1162_v8  ;;  %v1171_v11 = vmul.f32 %v1152_v7, %v2424_v4 }
 0xb41   :  { %v1170_v56 = vsel %vm90_vm6, %v1783_v6, %v1167_v17 }
 0xb42   :  { %v1172_v53 = vmul.f32 %v1170_v56, %v1152_v7 }
 0xb44   :  { %1174 = vrot.lane.b32.xlu0 %v1172_v53, %s1891_s3 }
 0xbb6   :  { %v1175_v20 = vpop.permute.xlu0 %1174 }
 0xbb7   :  { %v2562_v21 = vadd.f32 %v1175_v20, %v1171_v11 }
 0xbb9   :  { %1784 = vtanh.f32 %v2562_v21 }
 0xbbf   :  { %v1785_v22 = vpop.eup %1784 }
 0xbc0   :  { %v1179_v34 = vmul.f32 %v1785_v22, %v1170_v56 }
 0xbc2   :  { %1207 = vrot.lane.b32.xlu1 %v1179_v34, %s1891_s3  ;;  %v1180_v35 = vmax.f32 %v1179_v34, 0.0 }
 0xbc4   :  { %1182 = vrot.lane.b32.xlu2 %v1180_v35, %s1891_s3 }
 0xc1e   :  { %v1183_v23 = vpop.permute.xlu2 %1182 }
 0xc1f   :  { %1684 = vmatmul.msk.f32.vlgmr.msra.gmra.mxu2 %vm93_vm10, %v1183_v23 }
 0xc20   :  { %1426 = vmatpush.msra.mxu2 %v2433_v9 }
 0xc22   :  { %1427 = vmatpush.msra.mxu2 %v2439_v32  ;;  %v2592_v32 = vld [vmem:[%s2677_s5] ss:$0 sm:$0xff] }
 0xc24   :  { %1428 = vmatpush.msra.mxu2 %v2445_v10 }
 0xc26   :  { %1429 = vmatpush.msra.mxu2 %v2451_v12  ;;  %v1829_v12 = vld [vmem:[%s2678_s6 + $0x38] sm:$0xff] }
 0xc28   :  { %1430 = vmatpush.msra.mxu2 %v2457_v13  ;;  %v1830_v13 = vld [vmem:[%s2678_s6 + $0x30] sm:$0xff] }
 0xc2a   :  { %1431 = vmatpush.msra.mxu2 %v2463_v14  ;;  %v1831_v14 = vld [vmem:[%s2678_s6 + $0x28] sm:$0xff] }
 0xc2c   :  { %1432 = vmatpush.msra.mxu2 %v2469_v15  ;;  %v1832_v15 = vld [vmem:[%s2678_s6 + $0x20] sm:$0xff] }
 0xc2e   :  { %1433 = vmatpush.msra.mxu2 %v2475_v16  ;;  %v1833_v16 = vld [vmem:[%s2678_s6 + $0x18] sm:$0xff] }
 0xc34   :  { %v1208_v4 = vpop.permute.xlu1 %1207 }
 0xc35   :  { %1685 = vmatmul.msk.f32.vlgmr.msra.gmra.mxu3 %vm93_vm10, %v1208_v4  ;;  %1686 = vmatmul.msk.f32.vlgmr.msra.gmra.mxu0 %vm93_vm10, %v1208_v4 }
 0xc36   :  { %1687 = vmatmul.msk.f32.vlgmr.msra.gmra.mxu1 %vm93_vm10, %v1208_v4  ;;  %1446 = vmatpush.msra.mxu3 %v2484_v18  ;;  %v1834_v18 = vld [vmem:[%s2678_s6 + $0x10] sm:$0xff] }
 0xc37   :  { %1496 = vmatpush.msra.mxu1 %v2487_v19  ;;  %1476 = vmatpush.msra.mxu0 %v2490_v47  ;;  %v1835_v19 = vld [vmem:[%s2678_s6 + $0x8] sm:$0xff]  ;;  %v1836_v47 = vld [vmem:[%s2678_s6] sm:$0xff]  ;;  %s1892_s6 = smov 1  }
 0xc38   :  { %1447 = vmatpush.msra.mxu3 %v2496_v48 }
 0xc3a   :  { %1448 = vmatpush.msra.mxu3 %v2502_v49 }
 0xc3c   :  { %1449 = vmatpush.msra.mxu3 %v2508_v50 }
 0xc3e   :  { %1450 = vmatpush.msra.mxu3 %v2514_v51 }
 0xc40   :  { %1451 = vmatpush.msra.mxu3 %v2520_v52 }
 0xc42   :  { %1452 = vmatpush.msra.mxu3 %v2526_v54 }
 0xc44   :  { %1453 = vmatpush.msra.mxu3 %v2532_v55 }
 0xca2   :  { %v2621_v48 = vpop.f32.mrf.mxu2 }
 0xcb2   :  { %v1248_v49 = vpop.f32.mrf.mxu0 }
 0xcb3   :  { %v1268_v50 = vpop.f32.mrf.mxu1 }
 0xcb8   :  { %v1228_v9 = vpop.f32.mrf.mxu3 }
 0xcb9   :  { %v1229_v10 = vadd.f32 %v2592_v32, %v1228_v9  ;;  %v2634_v9 = vld [vmem:[#allocation2] ss:$0 sm:$0xff] }
 0xcbb   :  { %1688 = vmatmul.msk.f32.vlgmr.msrb.gmra.mxu2 %vm137_vm0, %v1229_v10  ;;  %1689 = vmatmul.msk.f32.vlgmr.msrb.gmra.mxu3 %vm137_vm0, %v1229_v10  ;;  %v456_v10 = vadd.f32 %v2634_v9, %v2308_v43 }
 0xcbc   :  { %1568 = vmatpush.msrb.mxu2 %v1829_v12 }
 0xcbe   :  { %1569 = vmatpush.msrb.mxu2 %v1830_v13 }
 0xcc0   :  { %1570 = vmatpush.msrb.mxu2 %v1831_v14 }
 0xcc2   :  { %1571 = vmatpush.msrb.mxu2 %v1832_v15 }
 0xcc4   :  { %1572 = vmatpush.msrb.mxu2 %v1833_v16 }
 0xcc6   :  { %1573 = vmatpush.msrb.mxu2 %v1834_v18 }
 0xcc8   :  { %1574 = vmatpush.msrb.mxu2 %v1835_v19 }
 0xcca   :  { %1575 = vmatpush.msrb.mxu2 %v1836_v47 }
 0xd3e   :  { %v1291_v51 = vpop.f32.mrf.mxu2  ;;  %v1311_v52 = vpop.f32.mrf.mxu3 }
 0xd3f   :  { %v1292_v54 = vadd.f32 %v1291_v51, %v1248_v49  ;;  %v1312_v55 = vadd.f32 %v1311_v52, %v1268_v50 }
 0xd41   :  { %v1314_v36 = vadd.f32 %v1292_v54, %v2093_v24  ;;  %v1315_v37 = vadd.f32 %v1312_v55, %v2095_v25 }
 0xd43   :  { %v1690_v26 = vmul.f32 -1.442695, %v1314_v36  ;;  %v1691_v38 = vmul.f32 -1.442695, %v1315_v37 }
 0xd45   :  { %1786 = vpow2.f32 %v1690_v26 }
 0xd46   :  { %1788 = vpow2.f32 %v1691_v38 }
 0xd4b   :  { %v1787_v27 = vpop.eup %1786 }
 0xd4c   :  { %v1789_v39 = vpop.eup %1788  ;;  %v1324_v40 = vadd.f32 1.0, %v1787_v27 }
 0xd4d   :  { %v1325_v41 = vadd.f32 1.0, %v1789_v39 }
 0xd4e   :  { %1790 = vrcp.f32 %v1324_v40  ;;  %v1337_v30 = vand.u32 2147483648, %v1324_v40  ;;  %v1335_v58 = vand.u32 2147483647, %v1324_v40  ;;  %vm1331_vm14 = vweird.f32 %v1324_v40 }
 0xd4f   :  { %1792 = vrcp.f32 %v1325_v41  ;;  %v1352_v29 = vand.u32 2147483648, %v1325_v41  ;;  %v1350_v33 = vand.u32 2147483647, %v1325_v41  ;;  %vm1346_vm1 = vweird.f32 %v1325_v41 }
 0xd50   :  { %1794 = vtanh.f32 %v1315_v37  ;;  %v1338_v1 = vor.u32 1.1754944e-38, %v1337_v30  ;;  %vm1336_vm2 = vcmp.eq.f32.partialorder %v1335_v58, 8.507059e+37 }
 0xd51   :  { %v1353_v6 = vor.u32 1.1754944e-38, %v1352_v29  ;;  %vm1351_vm4 = vcmp.eq.f32.partialorder %v1350_v33, 8.507059e+37 }
 0xd54   :  { %v1791_v44 = vpop.eup %1790 }
 0xd55   :  { %v1793_v57 = vpop.eup %1792  ;;  %v1327_v61 = vmul.f32 %v1791_v44, %v1324_v40  ;;  %vm1332_vm12 = vweird.f32 %v1791_v44 }
 0xd56   :  { %v1342_v59 = vmul.f32 %v1793_v57, %v1325_v41  ;;  %vm1347_vm13 = vweird.f32 %v1793_v57  ;;  %vm1333_vm15 = vmor %vm1331_vm14, %vm1332_vm12  ;;  %v1795_v7 = vpop.eup %1794 }
 0xd57   :  { %v1328_v63 = vsub.f32 1.0, %v1327_v61  ;;  %vm1348_vm3 = vmor %vm1346_vm1, %vm1347_vm13  ;;  %vm1612_vm1 = vcmask 23552  }
 0xd58   :  { %v1343_v28 = vsub.f32 1.0, %v1342_v59 }
 0xd59   :  { %v1329_v62 = vmul.f32 %v1791_v44, %v1328_v63 }
 0xd5a   :  { %v1344_v60 = vmul.f32 %v1793_v57, %v1343_v28 }
 0xd5b   :  { %v1330_v31 = vadd.f32 %v1791_v44, %v1329_v62 }
 0xd5c   :  { %v1345_v2 = vadd.f32 %v1793_v57, %v1344_v60 }
 0xd5d   :  { %v1334_v5 = vsel %vm1333_vm15, %v1791_v44, %v1330_v31  ;;  %vm1610_vm15 = vcmask 15360  }
 0xd5e   :  { %v1339_v8 = vsel %vm1336_vm2, %v1338_v1, %v1334_v5  ;;  %v1349_v17 = vsel %vm1348_vm3, %v1793_v57, %v1345_v2  ;;  %v643_v5 = vadd.f32 %v2634_v9, %v2362_v46  ;;  %v830_v46 = vadd.f32 %v2634_v9, %v2416_v3 }
 0xd5f   :  { %v1354_v56 = vsel %vm1351_vm4, %v1353_v6, %v1349_v17  ;;  %v1358_v20 = vmul.f32 %v1339_v8, %v2562_v21  ;;  %v1017_v21 = vadd.f32 %v2634_v9, %v2554_v0  ;;  %v1204_v6 = vadd.f32 %v2634_v9, %v2621_v48 }
 0xd60   :  { %v1357_v53 = vsel %vm90_vm6, %v1795_v7, %v1354_v56  ;;  %v266_v3 = vadd.f32 %v2634_v9, %v2306_v42  ;;  %vm1614_vm2 = vcmask 31744   ;;  %vm1618_vm3 = vcmask 48128  }
 0xd61   :  { %v1359_v11 = vmul.f32 %v1357_v53, %v1339_v8  ;;  %vm1620_vm4 = vcmask 56320  }
 0xd63   :  { %1361 = vrot.lane.b32.xlu0 %v1359_v11, %s1891_s3 }
 0xdd5   :  { %v1362_v22 = vpop.permute.xlu0 %1361 }
 0xdd6   :  { %v2629_v34 = vadd.f32 %v1362_v22, %v1358_v20 }
 0xdd8   :  { %1796 = vtanh.f32 %v2629_v34 }
 0xdde   :  { %v1797_v35 = vpop.eup %1796 }
 0xddf   :  { %v1366_v23 = vmul.f32 %v1797_v35, %v1357_v53 }
 0xde1   :  { %1394 = vrot.lane.b32.xlu1 %v1366_v23, %s1891_s3  ;;  %v1367_v4 = vmax.f32 %v1366_v23, 0.0 }
 0xde3   :  { %1369 = vrot.lane.b32.xlu2 %v1367_v4, %s1891_s3 }
 0xdeb   :  { %1581 = vrot.lane.b32.xlu2 %v456_v10, %s1892_s6 }
 0xdf3   :  { %1593 = vrot.lane.b32.xlu2 %v1017_v21, %s1893_s26 }
 0xe3d   :  { %v1370_v12 = vpop.permute.xlu2 %1369 }
 0xe3e   :  { %1692 = vmatmul.msk.f32.vlgmr.msrb.gmra.mxu0 %vm93_vm10, %v1370_v12 }
 0xe53   :  { %v1395_v13 = vpop.permute.xlu1 %1394 }
 0xe54   :  { %1693 = vmatmul.msk.f32.vlgmr.msrb.gmra.mxu1 %vm93_vm10, %v1395_v13  ;;  %1694 = vmatmul.msk.f32.vlgmr.msra.gmra.mxu2 %vm93_vm10, %v1395_v13 }
 0xe55   :  { %1695 = vmatmul.msk.f32.vlgmr.msra.gmra.mxu3 %vm93_vm10, %v1395_v13 }
 0xebb   :  { %v2647_v0 = vpop.f32.mrf.mxu0 }
 0xebc   :  { %v1391_v48 = vadd.f32 %v2634_v9, %v2647_v0 }
 0xed1   :  { %v1415_v14 = vpop.f32.mrf.mxu1 }
 0xed2   :  { %v1416_v43 = vadd.f32 %v2592_v32, %v1415_v14 }
 0xed4   :  { %1696 = vmatmul.msk.f32.vlgmr.msra.gmra.mxu0 %vm137_vm0, %v1416_v43  ;;  %1697 = vmatmul.msk.f32.vlgmr.msra.gmra.mxu1 %vm137_vm0, %v1416_v43 }
 0xed7   :  { %v1435_v15 = vpop.f32.mrf.mxu2 }
 0xed8   :  { %v1455_v16 = vpop.f32.mrf.mxu3 }
 0xf51   :  { %v1478_v18 = vpop.f32.mrf.mxu0  ;;  %v1498_v19 = vpop.f32.mrf.mxu1 }
 0xf52   :  { %v1479_v47 = vadd.f32 %v1478_v18, %v1435_v15  ;;  %v1499_v49 = vadd.f32 %v1498_v19, %v1455_v16 }
 0xf54   :  { %v1501_v50 = vadd.f32 %v1479_v47, %v2093_v24  ;;  %v1502_v51 = vadd.f32 %v1499_v49, %v2095_v25 }
 0xf56   :  { %v1698_v52 = vmul.f32 -1.442695, %v1501_v50  ;;  %v1699_v54 = vmul.f32 -1.442695, %v1502_v51 }
 0xf58   :  { %1798 = vpow2.f32 %v1698_v52 }
 0xf59   :  { %1800 = vpow2.f32 %v1699_v54 }
 0xf5e   :  { %v1799_v32 = vpop.eup %1798 }
 0xf5f   :  { %v1801_v55 = vpop.eup %1800  ;;  %v1511_v36 = vadd.f32 1.0, %v1799_v32 }
 0xf60   :  { %v1512_v37 = vadd.f32 1.0, %v1801_v55 }
 0xf61   :  { %1802 = vrcp.f32 %v1511_v36  ;;  %v1524_v41 = vand.u32 2147483648, %v1511_v36  ;;  %v1522_v25 = vand.u32 2147483647, %v1511_v36  ;;  %vm1518_vm8 = vweird.f32 %v1511_v36 }
 0xf62   :  { %1804 = vrcp.f32 %v1512_v37  ;;  %v1539_v57 = vand.u32 2147483648, %v1512_v37  ;;  %v1537_v59 = vand.u32 2147483647, %v1512_v37  ;;  %vm1533_vm11 = vweird.f32 %v1512_v37 }
 0xf63   :  { %1806 = vtanh.f32 %v1502_v51  ;;  %v1525_v30 = vor.u32 1.1754944e-38, %v1524_v41  ;;  %vm1523_vm12 = vcmp.eq.f32.partialorder %v1522_v25, 8.507059e+37 }
 0xf64   :  { %v1540_v58 = vor.u32 1.1754944e-38, %v1539_v57  ;;  %vm1538_vm14 = vcmp.eq.f32.partialorder %v1537_v59, 8.507059e+37 }
 0xf67   :  { %v1803_v26 = vpop.eup %1802 }
 0xf68   :  { %v1805_v38 = vpop.eup %1804  ;;  %v1514_v27 = vmul.f32 %v1803_v26, %v1511_v36  ;;  %vm1519_vm5 = vweird.f32 %v1803_v26 }
 0xf69   :  { %v1529_v39 = vmul.f32 %v1805_v38, %v1512_v37  ;;  %vm1534_vm7 = vweird.f32 %v1805_v38  ;;  %vm1520_vm9 = vmor %vm1518_vm8, %vm1519_vm5  ;;  %v1807_v29 = vpop.eup %1806 }
 0xf6a   :  { %v1515_v40 = vsub.f32 1.0, %v1514_v27  ;;  %vm1535_vm13 = vmor %vm1533_vm11, %vm1534_vm7 }
 0xf6b   :  { %v1530_v24 = vsub.f32 1.0, %v1529_v39 }
 0xf6c   :  { %v1516_v44 = vmul.f32 %v1803_v26, %v1515_v40 }
 0xf6d   :  { %v1531_v61 = vmul.f32 %v1805_v38, %v1530_v24 }
 0xf6e   :  { %v1517_v63 = vadd.f32 %v1803_v26, %v1516_v44 }
 0xf6f   :  { %v1532_v28 = vadd.f32 %v1805_v38, %v1531_v61 }
 0xf70   :  { %v1521_v62 = vsel %vm1520_vm9, %v1803_v26, %v1517_v63 }
 0xf71   :  { %v1526_v60 = vsel %vm1523_vm12, %v1525_v30, %v1521_v62  ;;  %v1536_v33 = vsel %vm1535_vm13, %v1805_v38, %v1532_v28 }
 0xf72   :  { %v1541_v31 = vsel %vm1538_vm14, %v1540_v58, %v1536_v33  ;;  %v1545_v7 = vmul.f32 %v1526_v60, %v2629_v34  ;;  %v1582_v34 = vpop.permute.xlu2 %1581 }
 0xf73   :  { %v1544_v1 = vsel %vm90_vm6, %v1807_v29, %v1541_v31  ;;  %vm1608_vm6 = vcmask 7168  }
 0xf74   :  { %v1546_v2 = vmul.f32 %v1544_v1, %v1526_v60  ;;  %v1609_v4 = vsel %vm1608_vm6, %v266_v3, %v1582_v34 }
 0xf76   :  { %1548 = vrot.lane.b32.xlu0 %v1546_v2, %s1891_s3 }
 0xf7a   :  { %v1594_v10 = vpop.permute.xlu2 %1593 }
 0xf7e   :  { %1585 = vrot.lane.b32.xlu0 %v643_v5, %s1894_s27 }
 0xf86   :  { %1597 = vrot.lane.b32.xlu0 %v1204_v6, %s1895_s4 }
 0xfe8   :  { %v1549_v8 = vpop.permute.xlu0 %1548 }
 0xfe9   :  { %v1551_v17 = vadd.f32 %v1549_v8, %v1545_v7 }
 0xfeb   :  { %1808 = vtanh.f32 %v1551_v17 }
 0xff0   :  { %v1586_v23 = vpop.permute.xlu0 %1585 }
 0xff1   :  { %v1809_v45 = vpop.eup %1808  ;;  %v1611_v21 = vsel %vm1610_vm15, %v1609_v4, %v1586_v23 }
 0xff2   :  { %v1553_v56 = vmul.f32 %v1809_v45, %v1544_v1 }
 0xff4   :  { %v1554_v53 = vmax.f32 %v1553_v56, 0.0 }
 0xff6   :  { %1556 = vrot.lane.b32.xlu1 %v1554_v53, %s1891_s3  ;;  %s1899_s3 = smov [#allocation6]  }
 0xff7   :  { %s1628_s9 = sshll.u32 %s1899_s3, 4  ;;  %s1629_s9 = int_to_ptr.vmem [resolvable:$true] %s1628_s9 }
 0xff8   :  { %v1598_v43 = vpop.permute.xlu0 %1597 }
 0xffe   :  { %1589 = vrot.lane.b32.xlu1 %v830_v46, %s1896_s28 }
0x1006   :  { %1601 = vrot.lane.b32.xlu1 %v1391_v48, %s1897_s29 }
0x1068   :  { %v1557_v11 = vpop.permute.xlu1 %1556 }
0x1069   :  { %1700 = vmatmul.msk.f32.vlgmr.msrb.gmra.mxu2 %vm93_vm10, %v1557_v11  ;;  %vm1616_vm10 = vcmask 39936  }
0x1070   :  { %v1590_v35 = vpop.permute.xlu1 %1589 }
0x1071   :  { %v1613_v12 = vsel %vm1612_vm1, %v1611_v21, %v1590_v35 }
0x1072   :  { %v1615_v13 = vsel %vm1614_vm2, %v1613_v12, %v1594_v10 }
0x1073   :  { %v1617_v42 = vsel %vm1616_vm10, %v1615_v13, %v1598_v43 }
0x1078   :  { %v1602_v14 = vpop.permute.xlu1 %1601 }
0x10ec   :  { %v1577_v20 = vpop.f32.mrf.mxu2 }
0x10ed   :  { %v1578_v22 = vadd.f32 %v2634_v9, %v1577_v20  ;;  %v1619_v9 = vsel %vm1618_vm3, %v1617_v42, %v1602_v14 }
0x10ef   :  { %1605 = vrot.lane.b32.xlu2 %v1578_v22, %s1898_s30 }
0x1149   :  { %v1606_v0 = vpop.permute.xlu2 %1605 }
0x114a   :  { %v1621_v15 = vsel %vm1620_vm4, %v1619_v9, %v1606_v0 }
0x114b   :  { %1622 = vst.msk [vmem:[#allocation6] sm:$0xff] %vm137_vm0, %v1621_v15 }
0x114c   :  { %1633 = dma.vmem_to_hbm [thread:$0]  %s1629_s9, 128, %s1631_s11, [#allocation5]  }
0x114d   :  { %1887 = dma.done.wait [#allocation5], 128  }
0x114e   :  { %1888 = vsyncadd [#allocation5], 4294967168 }
0x114f   :  { %1638 = vsyncpa [#allocation4], 1 }
0x1150   :  { %1639 = vsyncpa [#allocation5], 1 }

</bundles_post_ra>
